<compile_context>
chip_gen: v6e
topology: v6e:2x2x1
jax: 0.10.0
libtpu: 0.0.40
codegen_flags: <defaults>
</compile_context>

<pallas_src>
import functools

import jax
import jax.numpy as jnp
from jax import lax
from jax.experimental import pallas as pl
from jax.experimental.pallas import tpu as pltpu


def _bpr_kernel(uid_ref, ij_ref, ut_ref, it_ref, out_ref):
    tb = uid_ref.shape[1]          # batch tile size (lane axis)
    nu = ut_ref.shape[1]
    ni = it_ref.shape[1]
    f32 = jnp.float32

    # One iota, reused for both one-hots (JAX does not CSE broadcasts).
    rows = max(nu, ni)
    iota = lax.broadcasted_iota(jnp.int32, (rows, 2 * tb), 0)

    # --- user gather: (D, NU) @ (NU, TB) -> (D, TB) -------------------------
    # Built and consumed before the (larger) item one-hot is materialized to
    # keep the live one-hot footprint small (spill avoidance).
    u_oh = (iota[:nu, :tb] == uid_ref[...]).astype(f32)            # (NU, TB)
    u_t = jnp.dot(ut_ref[...], u_oh,
                  preferred_element_type=f32,
                  precision=lax.Precision.HIGHEST)                 # (D, TB)

    # --- fused item_i | item_j gather: (D, NI) @ (NI, 2*TB) -> (D, 2*TB) ----
    # ij_ref holds [item_i tile | item_j tile] on the lane axis.
    ij_oh = (iota[:ni, :] == ij_ref[...]).astype(f32)              # (NI, 2*TB)
    vij_t = jnp.dot(it_ref[...], ij_oh,
                    preferred_element_type=f32,
                    precision=lax.Precision.HIGHEST)               # (D, 2*TB)

    # pred[b] = sum_d user_embed[d, b] * item_embed[d, b]  (sublane reduce).
    pred_i = jnp.sum(u_t * vij_t[:, :tb], axis=0, keepdims=True)   # (1, TB)
    pred_j = jnp.sum(u_t * vij_t[:, tb:], axis=0, keepdims=True)   # (1, TB)
    out_ref[...] = jnp.concatenate([pred_i, pred_j], axis=0)       # (2, TB)


def _round_up(x, m):
    return (x + m - 1) // m * m


@functools.partial(jax.jit, static_argnames=("tb",))
def bpr_forward(user_table, item_table, user_id, item_i_id, item_j_id, *, tb=None):
    """Pallas equivalent of BPRModel.forward. Returns (pred_i, pred_j), each (B,)."""
    B = user_id.shape[0]
    NU, D = user_table.shape
    NI, _ = item_table.shape

    # Tile size: the largest lane-dense tile up to 512, while keeping >= 2
    # tiles once the batch exceeds 128 so v7x's two TensorCores both get work
    # (on v5e/v6e, single-core, a single big tile would also be fine).
    if tb is None:
        b128 = _round_up(B, 128)
        tb = 128 if b128 <= 128 else min(512, _round_up(b128 // 2, 128))
    b_pad = _round_up(B, tb)
    num_tiles = b_pad // tb

    def prep(ids):
        ids = ids.astype(jnp.int32).reshape(B)
        return jnp.pad(ids, (0, b_pad - B))    # pad with id 0 (valid row); sliced off below

    uid = prep(user_id).reshape(1, b_pad)
    # Interleave item_i / item_j ids per tile so each grid step sees
    # [i-tile | j-tile] on the lane axis -> one (NI, 2*TB) one-hot / matmul.
    iid = prep(item_i_id).reshape(num_tiles, tb)
    jid = prep(item_j_id).reshape(num_tiles, tb)
    ij = jnp.concatenate([iid, jid], axis=1).reshape(1, 2 * b_pad)

    # Transpose tables in the wrapper (layout plumbing) so in-kernel compute
    # is (D, batch) with the batch on lanes.
    ut = user_table.T      # (D, NU)
    it = item_table.T      # (D, NI)

    preds = pl.pallas_call(
        _bpr_kernel,
        grid=(num_tiles,),
        in_specs=[
            pl.BlockSpec((1, tb), lambda t: (0, t)),        # user ids
            pl.BlockSpec((1, 2 * tb), lambda t: (0, t)),    # [item_i | item_j] ids
            # Whole tables, constant index_map -> fetched once, VMEM-resident.
            # TODO(synk): pipeline_mode=pl.Buffered(1) would drop the useless
            # second buffer if tables ever approach v7x's 32 MiB scoped VMEM.
            pl.BlockSpec((D, NU), lambda t: (0, 0)),
            pl.BlockSpec((D, NI), lambda t: (0, 0)),
        ],
        out_specs=pl.BlockSpec((2, tb), lambda t: (0, t)),  # rows: [pred_i; pred_j]
        out_shape=jax.ShapeDtypeStruct((2, b_pad), jnp.float32),
        compiler_params=pltpu.CompilerParams(
            # Independent batch tiles -> shard across v7x's two TensorCores
            # (only helps when num_tiles >= 2; harmless otherwise).
            dimension_semantics=("parallel",),
            # Tiny footprint; explicit limit keeps us under v5e's 16 MiB default
            # scoped VMEM and v7x's 64 MiB physical VMEM with headroom.
            vmem_limit_bytes=32 * 1024 * 1024,
        ),
        # TODO(synk): for production-size tables that no longer fit VMEM (and
        # where the O(NU + 2*NI) one-hot build would saturate the VALU, first
        # on v5e), switch to a scalar-prefetch / double-buffered DMA gather.
    )(uid, ij, ut, it)

    return preds[0, :B], preds[1, :B]


if __name__ == "__main__":
    # Model hyper-parameters (small, consistent with the nn.Embedding shapes).
    num_users = 64
    num_items = 128
    embedding_dim = 32
    batch = 8

    key = jax.random.PRNGKey(0)
    k_user, k_item, k_u, k_i, k_j = jax.random.split(key, 5)

    # Deterministic parameter init (nn.Embedding default ~ N(0, 1)).
    user_table = jax.random.normal(k_user, (num_users, embedding_dim), jnp.float32)
    item_table = jax.random.normal(k_item, (num_items, embedding_dim), jnp.float32)

    # Example inputs: integer id batches.
    user_id = jax.random.randint(k_u, (batch,), 0, num_users, jnp.int32)
    item_i_id = jax.random.randint(k_i, (batch,), 0, num_items, jnp.int32)
    item_j_id = jax.random.randint(k_j, (batch,), 0, num_items, jnp.int32)

    pred_i, pred_j = bpr_forward(user_table, item_table, user_id, item_i_id, item_j_id)
    jax.block_until_ready((pred_i, pred_j))

    # Pure-JAX reference check (same semantics as the torch forward).
    ref_i = jnp.sum(user_table[user_id] * item_table[item_i_id], axis=1)
    ref_j = jnp.sum(user_table[user_id] * item_table[item_j_id], axis=1)
    assert pred_i.shape == (batch,) and pred_j.shape == (batch,)
    assert jnp.allclose(pred_i, ref_i, atol=1e-5), (pred_i, ref_i)
    assert jnp.allclose(pred_j, ref_j, atol=1e-5), (pred_j, ref_j)

    print("KERNEL_OK")
</pallas_src>

<mosaic_0001>
module attributes {stable_mosaic.version = 11 : i64} {
  func.func @_bpr_kernel(%arg0: i32, %arg1: memref<1x128xi32, #tpu.memory_space<vmem>>, %arg2: memref<1x256xi32, #tpu.memory_space<vmem>>, %arg3: memref<32x64xf32, #tpu.memory_space<vmem>>, %arg4: memref<32x128xf32, #tpu.memory_space<vmem>>, %arg5: memref<2x128xf32, #tpu.memory_space<vmem>>) attributes {dimension_semantics = [#tpu.dimension_semantics<parallel>], iteration_bounds = array<i64: 1>, scalar_prefetch = 0 : i64, scratch_operands = 0 : i64, tpu.core_type = #tpu.core_type<tc>, window_params = [{transform_indices = @transform_0, window_bounds = array<i64: 1, 128>}, {transform_indices = @transform_1, window_bounds = array<i64: 1, 256>}, {pipeline_mode = #tpu.pipeline_mode<synchronous>, transform_indices = @transform_2, window_bounds = array<i64: 32, 64>}, {pipeline_mode = #tpu.pipeline_mode<synchronous>, transform_indices = @transform_3, window_bounds = array<i64: 32, 128>}, {transform_indices = @transform_4, window_bounds = array<i64: 2, 128>}]} {
    %0 = tpu.iota {dimensions = array<i32: 0>} : vector<128x256xi32>
    %1 = vector.extract_strided_slice %0 {offsets = [0, 0], sizes = [64, 128], strides = [1, 1]} : vector<128x256xi32> to vector<64x128xi32>
    %c0 = arith.constant 0 : index
    %c0_0 = arith.constant 0 : index
    %2 = vector.load %arg1[%c0, %c0_0] : memref<1x128xi32, #tpu.memory_space<vmem>>, vector<1x128xi32>
    %3 = vector.broadcast %2 : vector<1x128xi32> to vector<64x128xi32>
    %4 = arith.cmpi eq, %1, %3 : vector<64x128xi32>
    %5 = arith.extui %4 : vector<64x128xi1> to vector<64x128xi32>
    %6 = arith.sitofp %5 : vector<64x128xi32> to vector<64x128xf32>
    %c0_1 = arith.constant 0 : index
    %c0_2 = arith.constant 0 : index
    %7 = vector.load %arg3[%c0_1, %c0_2] : memref<32x64xf32, #tpu.memory_space<vmem>>, vector<32x64xf32>
    %cst = arith.constant dense<0.000000e+00> : vector<32x128xf32>
    %8 = tpu.matmul %7, %6, %cst {dimension_numbers = #tpu.dot_dimension_numbers<[1], [0], [0], [1], [0, 0, 1, 1], [], []>, precision = #tpu.contract_precision<fp32>} : vector<32x64xf32>, vector<64x128xf32>, vector<32x128xf32> -> vector<32x128xf32>
    %c0_3 = arith.constant 0 : index
    %c0_4 = arith.constant 0 : index
    %9 = vector.load %arg2[%c0_3, %c0_4] : memref<1x256xi32, #tpu.memory_space<vmem>>, vector<1x256xi32>
    %10 = vector.broadcast %9 : vector<1x256xi32> to vector<128x256xi32>
    %11 = arith.cmpi eq, %0, %10 : vector<128x256xi32>
    %12 = arith.extui %11 : vector<128x256xi1> to vector<128x256xi32>
    %13 = arith.sitofp %12 : vector<128x256xi32> to vector<128x256xf32>
    %c0_5 = arith.constant 0 : index
    %c0_6 = arith.constant 0 : index
    %14 = vector.load %arg4[%c0_5, %c0_6] : memref<32x128xf32, #tpu.memory_space<vmem>>, vector<32x128xf32>
    %cst_7 = arith.constant dense<0.000000e+00> : vector<32x256xf32>
    %15 = tpu.matmul %14, %13, %cst_7 {dimension_numbers = #tpu.dot_dimension_numbers<[1], [0], [0], [1], [0, 0, 1, 1], [], []>, precision = #tpu.contract_precision<fp32>} : vector<32x128xf32>, vector<128x256xf32>, vector<32x256xf32> -> vector<32x256xf32>
    %16 = vector.extract_strided_slice %15 {offsets = [0, 0], sizes = [32, 128], strides = [1, 1]} : vector<32x256xf32> to vector<32x128xf32>
    %17 = arith.mulf %8, %16 : vector<32x128xf32>
    %cst_8 = arith.constant dense<0.000000e+00> : vector<128xf32>
    %18 = vector.multi_reduction <add>, %17, %cst_8 [0] : vector<32x128xf32> to vector<128xf32>
    %19 = vector.shape_cast %18 : vector<128xf32> to vector<1x128xf32>
    %20 = vector.extract_strided_slice %15 {offsets = [0, 128], sizes = [32, 128], strides = [1, 1]} : vector<32x256xf32> to vector<32x128xf32>
    %21 = arith.mulf %8, %20 : vector<32x128xf32>
    %cst_9 = arith.constant dense<0.000000e+00> : vector<128xf32>
    %22 = vector.multi_reduction <add>, %21, %cst_9 [0] : vector<32x128xf32> to vector<128xf32>
    %23 = vector.shape_cast %22 : vector<128xf32> to vector<1x128xf32>
    %24 = tpu.concatenate %19, %23 in 0 : vector<1x128xf32>, vector<1x128xf32> -> vector<2x128xf32>
    %c0_10 = arith.constant 0 : index
    %c0_11 = arith.constant 0 : index
    %25 = vector.load %arg5[%c0_10, %c0_11] : memref<2x128xf32, #tpu.memory_space<vmem>>, vector<2x128xf32>
    tpu.vector_store %arg5[%c0_10, %c0_11], %24 {strides = array<i32>} : memref<2x128xf32, #tpu.memory_space<vmem>>, vector<2x128xf32>,
    return
  }
  func.func @transform_0(%arg0: i32) -> (i32, i32) {
    %c0_i32 = arith.constant 0 : i32
    %c0_i32_0 = arith.constant 0 : i32
    return %c0_i32, %arg0 : i32, i32
  }
  func.func @transform_1(%arg0: i32) -> (i32, i32) {
    %c0_i32 = arith.constant 0 : i32
    %c0_i32_0 = arith.constant 0 : i32
    return %c0_i32, %arg0 : i32, i32
  }
  func.func @transform_2(%arg0: i32) -> (i32, i32) {
    %c0_i32 = arith.constant 0 : i32
    %c0_i32_0 = arith.constant 0 : i32
    %c0_i32_1 = arith.constant 0 : i32
    return %c0_i32, %c0_i32_0 : i32, i32
  }
  func.func @transform_3(%arg0: i32) -> (i32, i32) {
    %c0_i32 = arith.constant 0 : i32
    %c0_i32_0 = arith.constant 0 : i32
    %c0_i32_1 = arith.constant 0 : i32
    return %c0_i32, %c0_i32_0 : i32, i32
  }
  func.func @transform_4(%arg0: i32) -> (i32, i32) {
    %c0_i32 = arith.constant 0 : i32
    %c0_i32_0 = arith.constant 0 : i32
    return %c0_i32, %arg0 : i32, i32
  }
}

</mosaic_0001>

<bundles_post_ra>
// kernel: bpr_forward.1
= control target key start
LH: loop header
LB: loop body
LE: loop exit
PB: predicated region body
PF: predicated region fallthrough
CT: control target
= control target key end

     0   :  { %9 = vsyncpa [#allocation3], 0  ;;  %s3838_s0 = inlined_call_operand.vmem [shape: s32[1,128], index: 0, kind: input, shape index: {}]   ;;  %s3839_s1 = inlined_call_operand.vmem [shape: s32[1,256], index: 1, kind: input, shape index: {}]   ;;  %s3840_s2 = inlined_call_operand.hbm [shape: f32[32,64], index: 2, kind: input, shape index: {}]   ;;  %s3841_s3 = inlined_call_operand.hbm [shape: f32[32,128], index: 3, kind: input, shape index: {}]   ;;  %s3842_s4 = inlined_call_operand.vmem [shape: f32[2,128], index: 4, kind: output, shape index: {}]  }
   0x1   :  { %10 = vsyncpa [#allocation5], 0  ;;  %s2335_s15 = smov [#allocation2]  }
   0x2   :  { %s20_s16 = sshll.u32 %s2335_s15, 4  ;;  %s21_s16 = int_to_ptr.vmem [resolvable:$true] %s20_s16 }
   0x3   :  { %s2299_s17 = scalar_lea.vmem %s21_s16, 512  ;;  %p2304_p1 = scmp.lt.s32.totalorder %s21_s16, %s21_s16 }
   0x4   :  { %p2300_p0 = scmp.ne.s32.totalorder %s21_s16, %s2299_s17  ;;  %p2305_p2 = scmp.lt.s32.totalorder %s2299_s17, %s2299_s17 }
   0x6   :  { %p2306_p3 = por %p2305_p2, %p2304_p1 }
   0x8   :  { %p2307_p4 = pnand %p2306_p3, %p2300_p0 }
   0xa   :  { %2310 = shalt.err (!%p2307_p4)
}
   0xb   :  { %s2336_s18 = smov 128   ;;  %s2337_s19 = smov 8  }
   0xc   :  { %26 = dma.hbm_to_vmem [thread:$0]  %s3840_s2, 512, %s21_s16, [#allocation3], %s2336_s18, %s2336_s18, %s2337_s19  }
   0xd   :  { %s2338_s22 = smov [#allocation4]  }
   0xe   :  { %s32_s23 = sshll.u32 %s2338_s22, 4  ;;  %s33_s23 = int_to_ptr.vmem [resolvable:$true] %s32_s23 }
   0xf   :  { %s2319_s24 = scalar_lea.vmem %s33_s23, 512  ;;  %p2324_p6 = scmp.lt.s32.totalorder %s33_s23, %s33_s23 }
  0x10   :  { %p2320_p5 = scmp.ne.s32.totalorder %s33_s23, %s2319_s24  ;;  %p2325_p7 = scmp.lt.s32.totalorder %s2319_s24, %s2319_s24 }
  0x12   :  { %p2326_p8 = por %p2325_p7, %p2324_p6 }
  0x14   :  { %p2327_p9 = pnand %p2326_p8, %p2320_p5 }
  0x16   :  { %2330 = shalt.err (!%p2327_p9)
}
  0x17   :  { %38 = dma.hbm_to_vmem [thread:$0]  %s3841_s3, 512, %s33_s23, [#allocation5], %s2336_s18, %s2336_s18, %s2337_s19  }
  0x18   :  { %2331 = dma.done.wait [#allocation3], 512  }
  0x19   :  { %2332 = vsyncadd [#allocation3], 4294966784 }
  0x1a   :  { %2333 = dma.done.wait [#allocation5], 512  }
  0x1b   :  { %2334 = vsyncadd [#allocation5], 4294966784  ;;  %v45_v0 = vlaneseq  ;;  %v1920_v9 = vld [vmem:[%s3838_s0] ss:$0 sm:$0xff]  ;;  %vm95_vm0 = vcmask 523264   ;;  %v3888_v15 = vmov 1.0  }
  0x1c   :  { %v91_v14 = vld [vmem:[#allocation2] sm:$0xff]  ;;  %v3869_v17 = vmov 0.0   ;;  %v92_v25 = vld [vmem:[#allocation2 + $0x8] sm:$0xff]  ;;  %v93_v53 = vld [vmem:[#allocation2 + $0x10] sm:$0xff] }
  0x1d   :  { %v2372_v1 = vshrl.u32 %v45_v0, 7  ;;  %v97_v29 = vsel %vm95_vm0, %v91_v14, 0  ;;  %v100_v35 = vsel %vm95_vm0, %v92_v25, 0  ;;  %v94_v54 = vld [vmem:[#allocation2 + $0x18] sm:$0xff]  ;;  %v103_v0 = vsel %vm95_vm0, %v93_v53, 0  ;;  %v879_v27 = vld [vmem:[#allocation4] sm:$0xff] }
  0x1e   :  { %v2477_v33 = vand.u32 4294901760, %v97_v29  ;;  %v2511_v43 = vand.u32 4294901760, %v100_v35 }
  0x1f   :  { %v2375_v2 = vadd.s32 56, %v2372_v1  ;;  %v2378_v3 = vadd.s32 48, %v2372_v1  ;;  %v2381_v4 = vadd.s32 40, %v2372_v1  ;;  %v2384_v5 = vadd.s32 32, %v2372_v1 }
  0x20   :  { %v2387_v6 = vadd.s32 24, %v2372_v1  ;;  %v2390_v7 = vadd.s32 16, %v2372_v1  ;;  %v2393_v8 = vadd.s32 8, %v2372_v1  ;;  %vm2458_vm8 = vcmp.eq.s32.totalorder %v2372_v1, %v1920_v9  ;;  %2191 = vmatprep.mubr.f32.mxu1 %v2477_v33 }
  0x21   :  { %3895 = vst [vmem:[#allocation8_spill] sm:$0xff] %v2375_v2  ;;  %3896 = vst [vmem:[#allocation9_spill] sm:$0xff] %v2378_v3  ;;  %vm2399_vm1 = vcmp.eq.s32.totalorder %v2375_v2, %v1920_v9  ;;  %vm2404_vm2 = vcmp.eq.s32.totalorder %v2378_v3, %v1920_v9  ;;  %vm2409_vm3 = vcmp.eq.s32.totalorder %v2381_v4, %v1920_v9  ;;  %v1921_v58 = vsel %vm2458_vm8, 1.0, %v3869_v17 }
  0x22   :  { %3897 = vst [vmem:[#allocation10_spill] sm:$0xff] %v2381_v4  ;;  %3898 = vst [vmem:[#allocation11_spill] sm:$0xff] %v2387_v6  ;;  %vm2414_vm4 = vcmp.eq.s32.totalorder %v2384_v5, %v1920_v9  ;;  %2153 = vmatprep.subr.msk.mxu0 %vm2399_vm1, %v3888_v15  ;;  %vm2422_vm5 = vcmp.eq.s32.totalorder %v2387_v6, %v1920_v9  ;;  %v1928_v18 = vsel %vm2399_vm1, 1.0, %v3869_v17  ;;  %v1927_v20 = vsel %vm2404_vm2, 1.0, %v3869_v17 }
  0x23   :  { %vm2430_vm6 = vcmp.eq.s32.totalorder %v2390_v7, %v1920_v9  ;;  %2154 = vmatpush3.msk.msra.mxu0 %vm2399_vm1, %v3888_v15  ;;  %v2440_v21 = vsub.f32 %v1928_v18, %v1928_v18  ;;  %v2442_v22 = vsub.f32 %v1927_v20, %v1927_v20  ;;  %vm2445_vm7 = vcmp.eq.s32.totalorder %v2393_v8, %v1920_v9 }
  0x24   :  { %v1926_v24 = vsel %vm2409_vm3, 1.0, %v3869_v17  ;;  %2155 = vmatprep.subr.msk.mxu0 %vm2404_vm2, %v3888_v15  ;;  %v1925_v28 = vsel %vm2414_vm4, 1.0, %v3869_v17  ;;  %v1924_v36 = vsel %vm2422_vm5, 1.0, %v3869_v17  ;;  %v1923_v37 = vsel %vm2430_vm6, 1.0, %v3869_v17 }
  0x25   :  { %v2455_v26 = vsub.f32 %v1926_v24, %v1926_v24  ;;  %2156 = vmatpush3.msk.msra.mxu0 %vm2404_vm2, %v3888_v15  ;;  %v2470_v30 = vand.u32 4294901760, %v2440_v21  ;;  %v2473_v31 = vand.u32 4294901760, %v2442_v22  ;;  %v2475_v32 = vsub.f32 %v1925_v28, %v1925_v28 }
  0x26   :  { %2157 = vmatprep.subr.msk.mxu0 %vm2409_vm3, %v3888_v15  ;;  %v2503_v41 = vsub.f32 %v97_v29, %v2477_v33  ;;  %v2513_v44 = vsub.f32 %v1924_v36, %v1924_v36  ;;  %v2515_v45 = vsub.f32 %v1923_v37, %v1923_v37  ;;  %v2527_v50 = vsub.f32 %v100_v35, %v2511_v43 }
  0x27   :  { %v2483_v34 = vand.u32 4294901760, %v2455_v26  ;;  %2158 = vmatpush3.msk.msra.mxu0 %vm2409_vm3, %v3888_v15  ;;  %v241_v38 = vsub.f32 %v2440_v21, %v2470_v30  ;;  %v248_v39 = vsub.f32 %v2442_v22, %v2473_v31  ;;  %v2500_v40 = vand.u32 4294901760, %v2475_v32 }
  0x28   :  { %2159 = vmatprep.subr.msk.mxu0 %vm2414_vm4, %v3888_v15  ;;  %v183_v49 = vand.u32 4294901760, %v2503_v41  ;;  %v2530_v51 = vand.u32 4294901760, %v2513_v44  ;;  %v2533_v52 = vand.u32 4294901760, %v2515_v45  ;;  %v1922_v57 = vsel %vm2445_vm7, 1.0, %v3869_v17 }
  0x29   :  { %v255_v42 = vsub.f32 %v2455_v26, %v2483_v34  ;;  %2160 = vmatpush3.msk.msra.mxu0 %vm2414_vm4, %v3888_v15  ;;  %v242_v46 = vand.u32 4294901760, %v241_v38  ;;  %v249_v47 = vand.u32 4294901760, %v248_v39  ;;  %v262_v48 = vsub.f32 %v2475_v32, %v2500_v40 }
  0x2a   :  { %2161 = vmatprep.subr.msk.mxu0 %vm2422_vm5, %v3888_v15  ;;  %v184_v56 = vsub.f32 %v2503_v41, %v183_v49  ;;  %v193_v59 = vand.u32 4294901760, %v2527_v50  ;;  %v269_v60 = vsub.f32 %v2513_v44, %v2530_v51  ;;  %v2553_v61 = vsub.f32 %v1922_v57, %v1922_v57 }
  0x2b   :  { %2162 = vmatpush3.msk.msra.mxu0 %vm2422_vm5, %v3888_v15  ;;  %2175 = vmatprep.subr.mxu1 %v242_v46  ;;  %v256_v55 = vand.u32 4294901760, %v255_v42  ;;  %v263_v62 = vand.u32 4294901760, %v262_v48  ;;  %v2558_v63 = vsub.f32 %v1921_v58, %v1921_v58  ;;  %v106_v9 = vsel %vm95_vm0, %v94_v54, 0 }
  0x2c   :  { %2163 = vmatprep.subr.msk.mxu0 %vm2430_vm6, %v3888_v15  ;;  %2176 = vmatpush3.msra.mxu1 %v242_v46  ;;  %v185_v14 = vand.u32 4294901760, %v184_v56  ;;  %v194_v18 = vsub.f32 %v2527_v50, %v193_v59  ;;  %v276_v20 = vsub.f32 %v2515_v45, %v2533_v52  ;;  %v2571_v24 = vand.u32 4294901760, %v2553_v61 }
  0x2d   :  { %2164 = vmatpush3.msk.msra.mxu0 %vm2430_vm6, %v3888_v15  ;;  %2177 = vmatprep.subr.mxu1 %v249_v47  ;;  %v2577_v25 = vand.u32 4294901760, %v2558_v63  ;;  %v2579_v28 = vand.u32 4294901760, %v103_v0  ;;  %v2581_v29 = vand.u32 4294901760, %v106_v9  ;;  %v270_v36 = vand.u32 4294901760, %v269_v60 }
  0x2e   :  { %2165 = vmatprep.subr.msk.mxu0 %vm2445_vm7, %v3888_v15  ;;  %2178 = vmatpush3.msra.mxu1 %v249_v47  ;;  %v195_v35 = vand.u32 4294901760, %v194_v18  ;;  %v283_v37 = vsub.f32 %v2553_v61, %v2571_v24  ;;  %v277_v42 = vand.u32 4294901760, %v276_v20  ;;  %v2640_v57 = vadd.s32 120, %v2372_v1 }
  0x2f   :  { %2166 = vmatpush3.msk.msra.mxu0 %vm2445_vm7, %v3888_v15  ;;  %2179 = vmatprep.subr.mxu1 %v256_v55  ;;  %v2592_v38 = vsub.f32 %v103_v0, %v2579_v28  ;;  %v2595_v39 = vsub.f32 %v106_v9, %v2581_v29  ;;  %v290_v46 = vsub.f32 %v2558_v63, %v2577_v25  ;;  %v2659_v60 = vadd.s32 112, %v2372_v1 }
  0x30   :  { %2167 = vmatprep.subr.msk.mxu0 %vm2458_vm8, %v3888_v15  ;;  %2180 = vmatpush3.msra.mxu1 %v256_v55  ;;  %v284_v48 = vand.u32 4294901760, %v283_v37  ;;  %v2704_v0 = vadd.s32 88, %v2372_v1 }
  0x31   :  { %2168 = vmatpush3.msk.msra.mxu0 %vm2458_vm8, %v3888_v15  ;;  %2181 = vmatprep.subr.mxu1 %v263_v62  ;;  %v203_v47 = vand.u32 4294901760, %v2592_v38  ;;  %v213_v53 = vand.u32 4294901760, %v2595_v39  ;;  %v291_v54 = vand.u32 4294901760, %v290_v46  ;;  %v2774_v46 = vadd.s32 72, %v2372_v1 }
  0x32   :  { %2169 = vmatprep.mubr.f32.mxu0 %v185_v14  ;;  %2182 = vmatpush3.msra.mxu1 %v263_v62  ;;  %v2723_v14 = vadd.s32 80, %v2372_v1 }
  0x33   :  { %2197 = vmatprep.subr.mxu0 %v2440_v21  ;;  %2170 = vmatmul.mubr.f32.vlgmr.msra.gmra.mxu0 %v195_v35  ;;  %v204_v55 = vsub.f32 %v2592_v38, %v203_v47  ;;  %3915 = vst [vmem:[#allocation12_spill] sm:$0xff] %v2774_v46 }
  0x34   :  { %2183 = vmatprep.subr.mxu1 %v270_v36  ;;  %2198 = vmatpush3.msra.mxu0 %v2440_v21  ;;  %v214_v21 = vsub.f32 %v2595_v39, %v213_v53 }
  0x35   :  { %2184 = vmatpush3.msra.mxu1 %v270_v36  ;;  %2199 = vmatprep.subr.mxu0 %v2442_v22 }
  0x36   :  { %2185 = vmatprep.subr.mxu1 %v277_v42  ;;  %2200 = vmatpush3.msra.mxu0 %v2442_v22  ;;  %v205_v22 = vand.u32 4294901760, %v204_v55  ;;  %v215_v56 = vand.u32 4294901760, %v214_v21 }
  0x37   :  { %2186 = vmatpush3.msra.mxu1 %v277_v42  ;;  %2201 = vmatprep.subr.mxu0 %v2455_v26 }
  0x38   :  { %2187 = vmatprep.subr.mxu1 %v284_v48  ;;  %2202 = vmatpush3.msra.mxu0 %v2455_v26  ;;  %v781_v26 = vsub.s32 1, %v2372_v1 }
  0x39   :  { %2188 = vmatpush3.msra.mxu1 %v284_v48  ;;  %2203 = vmatprep.subr.mxu0 %v2475_v32 }
  0x3a   :  { %2189 = vmatprep.subr.mxu1 %v291_v54  ;;  %2204 = vmatpush3.msra.mxu0 %v2475_v32  ;;  %v774_v32 = vld [vmem:[%s3839_s1] sm:$0x3] }
  0x3b   :  { %2190 = vmatpush3.msra.mxu1 %v291_v54  ;;  %2205 = vmatprep.subr.mxu0 %v2513_v44  ;;  %v2642_v58 = vrot.slane %v774_v32, %v781_v26 }
  0x3c   :  { %2192 = vmatmul.mubr.f32.vlgmr.msra.gmra.mxu1 %v2511_v43  ;;  %2206 = vmatpush3.msra.mxu0 %v2513_v44  ;;  %v777_v44 = vsub.s32 0, %v2372_v1 }
  0x3d   :  { %2219 = vmatprep.subr.msk.mxu1 %vm2399_vm1, %v3888_v15  ;;  %2207 = vmatprep.subr.mxu0 %v2515_v45  ;;  %vm3850_vm9 = vcmp.eq.s32.totalorder %v2640_v57, %v2642_v58  ;;  %vm3844_vm11 = vcmp.eq.s32.totalorder %v2659_v60, %v2642_v58 }
  0x3e   :  { %2220 = vmatpush3.msk.msra.mxu1 %vm2399_vm1, %v3888_v15  ;;  %2172 = vmatprep.mubr.f32.mxu0 %v205_v22  ;;  %v1984_v62 = vsel %vm3850_vm9, 1.0, %v3869_v17  ;;  %v2829_v22 = vadd.s32 64, %v2372_v1 }
  0x3f   :  { %2208 = vmatpush3.msra.mxu0 %v2515_v45  ;;  %2221 = vmatprep.subr.msk.mxu1 %vm2404_vm2, %v3888_v15  ;;  %v2652_v45 = vrot.slane %v774_v32, %v777_v44  ;;  %v2710_v9 = vsub.f32 %v1984_v62, %v1984_v62 }
  0x40   :  { %2173 = vmatmul.mubr.f32.gmra.mxu0 %v215_v56  ;;  %2209 = vmatprep.subr.mxu0 %v2553_v61  ;;  %3916 = vst [vmem:[#allocation13_spill] sm:$0xff] %v2829_v22 }
  0x41   :  { %2222 = vmatpush3.msk.msra.mxu1 %vm2404_vm2, %v3888_v15  ;;  %2210 = vmatpush3.msra.mxu0 %v2553_v61  ;;  %vm3849_vm10 = vcmp.eq.s32.totalorder %v2640_v57, %v2652_v45  ;;  %v2676_v61 = vadd.s32 104, %v2372_v1  ;;  %vm3843_vm12 = vcmp.eq.s32.totalorder %v2659_v60, %v2652_v45  ;;  %v3859_v36 = vand.u32 4294901760, %v2710_v9 }
  0x42   :  { %2223 = vmatprep.subr.msk.mxu1 %vm2409_vm3, %v3888_v15  ;;  %2211 = vmatprep.subr.mxu0 %v2558_v63  ;;  %v1981_v20 = vsel %vm3843_vm12, 1.0, %v3869_v17  ;;  %vm3864_vm12 = vcmp.eq.s32.totalorder %v2704_v0, %v2642_v58 }
  0x43   :  { %2224 = vmatpush3.msk.msra.mxu1 %vm2409_vm3, %v3888_v15  ;;  %2212 = vmatpush3.msra.mxu0 %v2558_v63  ;;  %v1983_v63 = vsel %vm3849_vm10, 1.0, %v3869_v17  ;;  %vm810_vm13 = vcmp.eq.s32.totalorder %v2676_v61, %v2642_v58  ;;  %vm3867_vm14 = vcmp.eq.s32.totalorder %v2676_v61, %v2652_v45  ;;  %v2763_v37 = vsub.f32 %v1981_v20, %v1981_v20 }
  0x44   :  { %2213 = vmatprep.mubr.f32.mxu0 %v2503_v41  ;;  %2225 = vmatprep.subr.msk.mxu1 %vm2414_vm4, %v3888_v15  ;;  %v2729_v18 = vsub.f32 %v1983_v63, %v1983_v63  ;;  %v1980_v35 = vsel %vm810_vm13, 1.0, %v3869_v17  ;;  %v1976_v48 = vsel %vm3864_vm12, 1.0, %v3869_v17  ;;  %v2814_v21 = vsub.f32 %v2710_v9, %v3859_v36 }
  0x45   :  { %2214 = vmatmul.mubr.f32.vlgmr.msra.gmra.mxu0 %v2527_v50  ;;  %2226 = vmatpush3.msk.msra.mxu1 %vm2414_vm4, %v3888_v15  ;;  %v2779_v41 = vsub.f32 %v1980_v35, %v1980_v35 }
  0x46   :  { %2241 = vmatprep.subr.mxu0 %v2470_v30  ;;  %2194 = vmatprep.mubr.f32.mxu1 %v2579_v28 }
  0x47   :  { %2227 = vmatprep.subr.msk.mxu1 %vm2422_vm5, %v3888_v15  ;;  %2242 = vmatpush3.msra.mxu0 %v2470_v30  ;;  %v2691_v30 = vadd.s32 96, %v2372_v1  ;;  %v3853_v44 = vand.u32 4294901760, %v2779_v41 }
  0x48   :  { %2195 = vmatmul.mubr.f32.gmra.mxu1 %v2581_v29  ;;  %2243 = vmatprep.subr.mxu0 %v2473_v31 }
  0x49   :  { %2228 = vmatpush3.msk.msra.mxu1 %vm2422_vm5, %v3888_v15  ;;  %2216 = vmatprep.mubr.f32.mxu0 %v2592_v38  ;;  %vm3845_vm15 = vcmp.eq.s32.totalorder %v2691_v30, %v2642_v58  ;;  %vm3846_vm0 = vcmp.eq.s32.totalorder %v2691_v30, %v2652_v45  ;;  %v2918_v13 = vsub.f32 %v2779_v41, %v3853_v44 }
  0x4a   :  { %2229 = vmatprep.subr.msk.mxu1 %vm2430_vm6, %v3888_v15  ;;  %2244 = vmatpush3.msra.mxu0 %v2473_v31  ;;  %v1982_v31 = vsel %vm3844_vm11, 1.0, %v3869_v17  ;;  %vm3863_vm11 = vcmp.eq.s32.totalorder %v2704_v0, %v2652_v45  ;;  %v1978_v42 = vsel %vm3845_vm15, 1.0, %v3869_v17  ;;  %vm3865_vm15 = vcmp.eq.s32.totalorder %v2723_v14, %v2642_v58 }
  0x4b   :  { %2217 = vmatmul.mubr.f32.gmra.mxu0 %v2595_v39  ;;  %2230 = vmatpush3.msk.msra.mxu1 %vm2430_vm6, %v3888_v15  ;;  %v1975_v50 = vsel %vm3863_vm11, 1.0, %v3869_v17  ;;  %v2809_v55 = vsub.f32 %v1978_v42, %v1978_v42  ;;  %v1974_v10 = vsel %vm3865_vm15, 1.0, %v3869_v17 }
  0x4c   :  { %2245 = vmatprep.subr.mxu0 %v2483_v34  ;;  %2231 = vmatprep.subr.msk.mxu1 %vm2445_vm7, %v3888_v15  ;;  %v2839_v56 = vsub.f32 %v1975_v50, %v1975_v50  ;;  %v2865_v39 = vsub.f32 %v1974_v10, %v1974_v10 }
  0x4d   :  { %2246 = vmatpush3.msra.mxu0 %v2483_v34  ;;  %2232 = vmatpush3.msk.msra.mxu1 %vm2445_vm7, %v3888_v15  ;;  %v2743_v34 = vsub.f32 %v1982_v31, %v1982_v31 }
  0x4e   :  { %2247 = vmatprep.subr.mxu0 %v2500_v40  ;;  %2233 = vmatprep.subr.msk.mxu1 %vm2458_vm8, %v3888_v15 }
  0x4f   :  { %2248 = vmatpush3.msra.mxu0 %v2500_v40  ;;  %2234 = vmatpush3.msk.msra.mxu1 %vm2458_vm8, %v3888_v15  ;;  %v1979_v40 = vsel %vm3867_vm14, 1.0, %v3869_v17 }
  0x50   :  { %2235 = vmatprep.mubr.f32.mxu1 %v183_v49  ;;  %2249 = vmatprep.subr.mxu0 %v2530_v51  ;;  %v1977_v49 = vsel %vm3846_vm0, 1.0, %v3869_v17  ;;  %vm3847_vm0 = vcmp.eq.s32.totalorder %v2723_v14, %v2652_v45  ;;  %v2807_v54 = vsub.f32 %v1979_v40, %v1979_v40 }
  0x51   :  { %2236 = vmatmul.mubr.f32.vlgmr.msra.gmra.mxu1 %v193_v59  ;;  %2250 = vmatpush3.msra.mxu0 %v2530_v51  ;;  %v3856_v51 = vand.u32 4294901760, %v2729_v18  ;;  %v3855_v59 = vand.u32 4294901760, %v2743_v34  ;;  %v2835_v38 = vsub.f32 %v1977_v49, %v1977_v49  ;;  %v1973_v26 = vsel %vm3847_vm0, 1.0, %v3869_v17 }
  0x52   :  { %2263 = vmatprep.subr.msk.mxu1 %vm2399_vm1, %v3888_v15  ;;  %2251 = vmatprep.subr.mxu0 %v2533_v52  ;;  %v2876_v62 = vsub.f32 %v1973_v26, %v1973_v26  ;;  %vm3871_vm0 = vcmp.eq.s32.totalorder %v2829_v22, %v2642_v58  ;;  %v3851_v31 = vand.u32 4294901760, %v2807_v54 }
  0x53   :  { %2264 = vmatpush3.msk.msra.mxu1 %vm2399_vm1, %v3888_v15  ;;  %2252 = vmatpush3.msra.mxu0 %v2533_v52  ;;  %vm3848_vm1 = vcmp.eq.s32.totalorder %v2774_v46, %v2642_v58  ;;  %v3854_v52 = vand.u32 4294901760, %v2763_v37  ;;  %v2851_v11 = vsub.f32 %v2729_v18, %v3856_v51  ;;  %v2856_v32 = vsub.f32 %v2743_v34, %v3855_v59 }
  0x54   :  { %2265 = vmatprep.subr.msk.mxu1 %vm2404_vm2, %v3888_v15  ;;  %2238 = vmatprep.mubr.f32.mxu1 %v203_v47  ;;  %v2837_v47 = vsub.f32 %v1976_v48, %v1976_v48  ;;  %v3857_v42 = vand.u32 4294901760, %v2835_v38  ;;  %v1970_v49 = vsel %vm3871_vm0, 1.0, %v3869_v17  ;;  %v2939_v10 = vsub.f32 %v2807_v54, %v3851_v31 }
  0x55   :  { %2253 = vmatprep.subr.mxu0 %v2571_v24  ;;  %2266 = vmatpush3.msk.msra.mxu1 %vm2404_vm2, %v3888_v15  ;;  %vm801_vm2 = vcmp.eq.s32.totalorder %v2774_v46, %v2652_v45  ;;  %v2881_v63 = vsub.f32 %v2763_v37, %v3854_v52  ;;  %v1034_v20 = vand.u32 4294901760, %v2851_v11  ;;  %v2971_v31 = vsub.f32 %v1970_v49, %v1970_v49 }
  0x56   :  { %2239 = vmatmul.mubr.f32.gmra.mxu1 %v213_v53  ;;  %2254 = vmatpush3.msra.mxu0 %v2571_v24  ;;  %v1028_v24 = vand.u32 4294901760, %v2814_v21  ;;  %v1972_v53 = vsel %vm3848_vm1, 1.0, %v3869_v17  ;;  %v1971_v12 = vsel %vm801_vm2, 1.0, %v3869_v17  ;;  %vm3874_vm1 = vcmp.eq.s32.totalorder %v2375_v2, %v2642_v58 }
  0x57   :  { %2267 = vmatprep.subr.msk.mxu1 %vm2409_vm3, %v3888_v15  ;;  %2255 = vmatprep.subr.mxu0 %v2577_v25  ;;  %v2905_v40 = vsub.f32 %v1972_v53, %v1972_v53  ;;  %v3858_v48 = vand.u32 4294901760, %v2837_v47  ;;  %v2934_v50 = vsub.f32 %v1971_v12, %v1971_v12  ;;  %v1968_v53 = vsel %vm3874_vm1, 1.0, %v3869_v17 }
  0x58   :  { %2268 = vmatpush3.msk.msra.mxu1 %vm2409_vm3, %v3888_v15  ;;  %2256 = vmatpush3.msra.mxu0 %v2577_v25  ;;  %vm799_vm3 = vcmp.eq.s32.totalorder %v2829_v22, %v2652_v45  ;;  %v3852_v25 = vand.u32 4294901760, %v2809_v55  ;;  %v3860_v52 = vand.u32 4294901760, %v2839_v56  ;;  %v2990_v51 = vsub.f32 %v1968_v53, %v1968_v53 }
  0x59   :  { %2257 = vmatprep.mubr.f32.mxu0 %v2477_v33  ;;  %2269 = vmatprep.subr.msk.mxu1 %vm2414_vm4, %v3888_v15  ;;  %v1969_v26 = vsel %vm799_vm3, 1.0, %v3869_v17  ;;  %v3861_v53 = vand.u32 4294901760, %v2865_v39  ;;  %v3862_v16 = vand.u32 4294901760, %v2876_v62 }
  0x5a   :  { %2258 = vmatmul.mubr.f32.vlgmr.msra.gmra.mxu0 %v2511_v43  ;;  %2270 = vmatpush3.msk.msra.mxu1 %vm2414_vm4, %v3888_v15  ;;  %vm3875_vm4 = vcmp.eq.s32.totalorder %v2375_v2, %v2652_v45  ;;  %v2958_v12 = vsub.f32 %v2809_v55, %v3852_v25  ;;  %v2976_v25 = vsub.f32 %v2835_v38, %v3857_v42 }
  0x5b   :  { %1985 = vmatprep.subr.msk.mxu0 %vm3850_vm9, %v3888_v15  ;;  %2271 = vmatprep.subr.msk.mxu1 %vm2422_vm5, %v3888_v15  ;;  %vm795_vm9 = vcmp.eq.s32.totalorder %v2378_v3, %v2652_v45  ;;  %v1967_v44 = vsel %vm3875_vm4, 1.0, %v3869_v17  ;;  %v2988_v59 = vsub.f32 %v1969_v26, %v1969_v26  ;;  %v2995_v42 = vsub.f32 %v2837_v47, %v3858_v48 }
  0x5c   :  { %1986 = vmatpush1.msk.msra.mxu0 %vm3849_vm10, %v3888_v15  ;;  %2272 = vmatpush3.msk.msra.mxu1 %vm2422_vm5, %v3888_v15  ;;  %vm3917_vm5 = vcmp.eq.s32.totalorder %v2659_v60, %v2642_v58  ;;  %vm3876_vm10 = vcmp.eq.s32.totalorder %v2378_v3, %v2642_v58  ;;  %v1965_v26 = vsel %vm795_vm9, 1.0, %v3869_v17  ;;  %v3024_v49 = vsub.f32 %v1967_v44, %v1967_v44 }
  0x5d   :  { %1987 = vmatprep.subr.msk.mxu0 %vm3917_vm5, %v3888_v15  ;;  %2260 = vmatprep.mubr.f32.mxu0 %v2579_v28  ;;  %vm3918_vm5 = vcmp.eq.s32.totalorder %v2659_v60, %v2652_v45  ;;  %v1966_v19 = vsel %vm3876_vm10, 1.0, %v3869_v17  ;;  %v3038_v48 = vsub.f32 %v2839_v56, %v3860_v52  ;;  %v3866_v44 = vand.u32 4294901760, %v2905_v40 }
  0x5e   :  { %2273 = vmatprep.subr.msk.mxu1 %vm2430_vm6, %v3888_v15  ;;  %1988 = vmatpush1.msk.msra.mxu0 %vm3918_vm5, %v3888_v15  ;;  %vm3919_vm5 = vcmp.eq.s32.totalorder %v2691_v30, %v2642_v58  ;;  %v3050_v23 = vsub.f32 %v1966_v19, %v1966_v19  ;;  %v3052_v36 = vsub.f32 %v1965_v26, %v1965_v26 }
  0x5f   :  { %2261 = vmatmul.mubr.f32.gmra.mxu0 %v2581_v29  ;;  %2274 = vmatpush3.msk.msra.mxu1 %vm2430_vm6, %v3888_v15  ;;  %vm794_vm6 = vcmp.eq.s32.totalorder %v2381_v4, %v2642_v58  ;;  %v3068_v19 = vsub.f32 %v2865_v39, %v3861_v53  ;;  %v3868_v53 = vand.u32 4294901760, %v2971_v31  ;;  %v3102_v35 = vsub.f32 %v2905_v40, %v3866_v44 }
  0x60   :  { %1989 = vmatprep.subr.msk.mxu0 %vm810_vm13, %v3888_v15  ;;  %2275 = vmatprep.subr.msk.mxu1 %vm2445_vm7, %v3888_v15  ;;  %v1964_v52 = vsel %vm794_vm6, 1.0, %v3869_v17 }
  0x61   :  { %1990 = vmatpush1.msk.msra.mxu0 %vm3867_vm14, %v3888_v15  ;;  %2276 = vmatpush3.msk.msra.mxu1 %vm2445_vm7, %v3888_v15  ;;  %vm793_vm7 = vcmp.eq.s32.totalorder %v2381_v4, %v2652_v45  ;;  %vm3924_vm14 = vcmp.eq.s32.totalorder %v2774_v46, %v2642_v58 }
  0x62   :  { %1991 = vmatprep.subr.msk.mxu0 %vm3919_vm5, %v3888_v15  ;;  %2277 = vmatprep.subr.msk.mxu1 %vm2458_vm8, %v3888_v15  ;;  %vm3920_vm5 = vcmp.eq.s32.totalorder %v2691_v30, %v2652_v45  ;;  %v1963_v26 = vsel %vm793_vm7, 1.0, %v3869_v17 }
  0x63   :  { %1992 = vmatpush1.msk.msra.mxu0 %vm3920_vm5, %v3888_v15  ;;  %2278 = vmatpush3.msk.msra.mxu1 %vm2458_vm8, %v3888_v15  ;;  %vm792_vm8 = vcmp.eq.s32.totalorder %v2384_v5, %v2642_v58  ;;  %vm791_vm5 = vcmp.eq.s32.totalorder %v2384_v5, %v2652_v45  ;;  %v3131_v44 = vsub.f32 %v1963_v26, %v1963_v26 }
  0x64   :  { %2279 = vmatprep.mubr.f32.mxu1 %v2477_v33  ;;  %1993 = vmatprep.subr.msk.mxu0 %vm3864_vm12, %v3888_v15  ;;  %v3082_v33 = vsub.f32 %v2876_v62, %v3862_v16  ;;  %v3097_v16 = vsub.f32 %v1964_v52, %v1964_v52  ;;  %vm3921_vm12 = vcmp.eq.s32.totalorder %v2723_v14, %v2652_v45  ;;  %v1962_v21 = vsel %vm792_vm8, 1.0, %v3869_v17 }
  0x65   :  { %2280 = vmatmul.mubr.f32.vlgmr.msra.gmra.mxu1 %v2511_v43  ;;  %1994 = vmatpush1.msk.msra.mxu0 %vm3863_vm11, %v3888_v15  ;;  %v1082_v43 = vand.u32 4294901760, %v3038_v48  ;;  %vm790_vm11 = vcmp.eq.s32.totalorder %v2387_v6, %v2642_v58  ;;  %v3922_v52 = vand.u32 4294901760, %v2934_v50  ;;  %v1961_v11 = vsel %vm791_vm5, 1.0, %v3869_v17 }
  0x66   :  { %1029 = vmatprep.subr.mxu1 %v1028_v24  ;;  %1995 = vmatprep.subr.msk.mxu0 %vm3865_vm15, %v3888_v15  ;;  %vm789_vm15 = vcmp.eq.s32.totalorder %v2387_v6, %v2652_v45  ;;  %v1088_v48 = vand.u32 4294901760, %v3068_v19  ;;  %v3146_v19 = vsub.f32 %v2971_v31, %v3868_v53  ;;  %v1960_v26 = vsel %vm790_vm11, 1.0, %v3869_v17 }
  0x67   :  { %1035 = vmatpush1.msra.mxu1 %v1034_v20  ;;  %1996 = vmatpush1.msk.msra.mxu0 %vm3921_vm12, %v3888_v15  ;;  %v3119_v24 = vsub.f32 %v2934_v50, %v3922_v52  ;;  %v3923_v20 = vand.u32 4294901760, %v2856_v32  ;;  %vm788_vm12 = vcmp.eq.s32.totalorder %v2390_v7, %v2642_v58  ;;  %v3925_v32 = vand.u32 4294901760, %v2881_v63 }
  0x68   :  { %2282 = vmatprep.mubr.f32.mxu1 %v2579_v28  ;;  %1997 = vmatprep.subr.msk.mxu0 %vm3924_vm14, %v3888_v15  ;;  %v1094_v28 = vand.u32 4294901760, %v3082_v33  ;;  %v1100_v63 = vand.u32 4294901760, %v3102_v35  ;;  %v3163_v33 = vsub.f32 %v1962_v21, %v1962_v21  ;;  %v1959_v53 = vsel %vm789_vm15, 1.0, %v3869_v17 }
  0x69   :  { %1041 = vmatprep.subr.mxu1 %v3923_v20  ;;  %v3926_v20 = vand.u32 4294901760, %v2988_v59  ;;  %2283 = vmatmul.mubr.f32.gmra.mxu1 %v2581_v29  ;;  %v1106_v29 = vand.u32 4294901760, %v3119_v24  ;;  %v1958_v35 = vsel %vm788_vm12, 1.0, %v3869_v17  ;;  %vm787_vm14 = vcmp.eq.s32.totalorder %v2390_v7, %v2652_v45 }
  0x6a   :  { %1047 = vmatpush1.msra.mxu1 %v3925_v32  ;;  %1998 = vmatpush1.msk.msra.mxu0 %vm801_vm2, %v3888_v15  ;;  %v3165_v32 = vsub.f32 %v1961_v11, %v1961_v11  ;;  %v3184_v21 = vand.u32 4294901760, %v879_v27  ;;  %v3192_v11 = vsub.f32 %v1960_v26, %v1960_v26  ;;  %v3929_v24 = vand.u32 4294901760, %v2990_v51 }
  0x6b   :  { %v3155_v52 = vsub.f32 %v2988_v59, %v3926_v20  ;;  %v3927_v20 = vand.u32 4294901760, %v2918_v13  ;;  %1999 = vmatprep.subr.msk.mxu0 %vm3871_vm0, %v3888_v15  ;;  %v3928_v13 = vand.u32 4294901760, %v2939_v10  ;;  %vm786_vm0 = vcmp.eq.s32.totalorder %v2393_v8, %v2642_v58 }
  0x6c   :  { %2000 = vmatpush1.msk.msra.mxu0 %vm799_vm3, %v3888_v15  ;;  %v3930_v10 = vand.u32 4294901760, %v2958_v12  ;;  %v1112_v26 = vand.u32 4294901760, %v3146_v19  ;;  %v3210_v22 = vsub.f32 %v1959_v53, %v1959_v53  ;;  %v3931_v17 = vand.u32 4294901760, %v2976_v25 }
  0x6d   :  { %1053 = vmatprep.subr.mxu1 %v3927_v20  ;;  %v3197_v20 = vsub.f32 %v2990_v51, %v3929_v24  ;;  %2001 = vmatprep.subr.msk.mxu0 %vm3874_vm1, %v3888_v15  ;;  %v3877_v24 = vand.u32 4294901760, %v3050_v23  ;;  %v3219_v12 = vsub.f32 %v1958_v35, %v1958_v35  ;;  %vm3892_vm1 = vcmp.eq.s32.totalorder %v2393_v8, %v2652_v45 }
  0x6e   :  { %1059 = vmatpush1.msra.mxu1 %v3928_v13  ;;  %v1118_v13 = vand.u32 4294901760, %v3155_v52  ;;  %2002 = vmatpush1.msk.msra.mxu0 %vm3875_vm4, %v3888_v15  ;;  %v3933_v25 = vand.u32 4294901760, %v2995_v42  ;;  %vm3891_vm4 = vcmp.eq.s32.totalorder %v2372_v1, %v2642_v58  ;;  %v3242_v35 = vsub.f32 %v879_v27, %v3184_v21 }
  0x6f   :  { %1065 = vmatprep.subr.mxu1 %v3930_v10  ;;  %v3932_v10 = vmov 0.0   ;;  %2003 = vmatprep.subr.msk.mxu0 %vm3876_vm10, %v3888_v15  ;;  %v1124_v42 = vand.u32 4294901760, %v3197_v20  ;;  %vm3890_vm10 = vcmp.eq.s32.totalorder %v2372_v1, %v2652_v45  ;;  %v3939_v46 = vand.u32 4294901760, %v3165_v32 }
  0x70   :  { %1071 = vmatpush1.msra.mxu1 %v3931_v17  ;;  %v1957_v19 = vsel %vm787_vm14, 1.0, %v3932_v10  ;;  %v1956_v17 = vsel %vm786_vm0, 1.0, %v3932_v10  ;;  %2004 = vmatpush1.msk.msra.mxu0 %vm795_vm9, %v3888_v15  ;;  %v1955_v20 = vsel %vm3892_vm1, 1.0, %v3932_v10 }
  0x71   :  { %1077 = vmatprep.subr.mxu1 %v3933_v25  ;;  %v3934_v25 = vand.u32 4294901760, %v3024_v49  ;;  %2005 = vmatprep.subr.msk.mxu0 %vm794_vm6, %v3888_v15  ;;  %v3259_v27 = vsub.f32 %v1957_v19, %v1957_v19  ;;  %v3935_v19 = vand.u32 4294901760, %v3052_v36  ;;  %v3300_v3 = vsub.f32 %v1955_v20, %v1955_v20 }
  0x72   :  { %1083 = vmatpush1.msra.mxu1 %v1082_v43  ;;  %v1135_v43 = vsub.f32 %v3050_v23, %v3877_v24  ;;  %2006 = vmatpush1.msk.msra.mxu0 %vm793_vm7, %v3888_v15  ;;  %v1954_v24 = vsel %vm3891_vm4, 1.0, %v3932_v10 }
  0x73   :  { %v1129_v53 = vsub.f32 %v3024_v49, %v3934_v25  ;;  %1089 = vmatprep.subr.mxu1 %v1088_v48  ;;  %v3273_v48 = vsub.f32 %v1956_v17, %v1956_v17  ;;  %v1141_v52 = vsub.f32 %v3052_v36, %v3935_v19  ;;  %2007 = vmatprep.subr.msk.mxu0 %vm792_vm8, %v3888_v15  ;;  %v1953_v19 = vsel %vm3890_vm10, 1.0, %v3932_v10 }
  0x74   :  { %1095 = vmatpush1.msra.mxu1 %v1094_v28  ;;  %v3936_v28 = vand.u32 4294901760, %v3097_v16  ;;  %2008 = vmatpush1.msk.msra.mxu0 %vm791_vm5, %v3888_v15  ;;  %v3310_v4 = vsub.f32 %v1954_v24, %v1954_v24  ;;  %v3938_v25 = vand.u32 4294901760, %v3163_v33  ;;  %v1165_v24 = vsub.f32 %v3165_v32, %v3939_v46 }
  0x75   :  { %1101 = vmatprep.subr.mxu1 %v1100_v63  ;;  %v1130_v63 = vand.u32 4294901760, %v1129_v53  ;;  %2009 = vmatprep.subr.msk.mxu0 %vm790_vm11, %v3888_v15 }
  0x76   :  { %v1147_v17 = vsub.f32 %v3097_v16, %v3936_v28  ;;  %1107 = vmatpush1.msra.mxu1 %v1106_v29  ;;  %v3937_v28 = vand.u32 4294901760, %v3131_v44  ;;  %v1136_v29 = vand.u32 4294901760, %v1135_v43  ;;  %v1159_v53 = vsub.f32 %v3163_v33, %v3938_v25  ;;  %2010 = vmatpush1.msk.msra.mxu0 %vm789_vm15, %v3888_v15 }
  0x77   :  { %1113 = vmatprep.subr.mxu1 %v1112_v26  ;;  %v1142_v26 = vand.u32 4294901760, %v1141_v52  ;;  %2011 = vmatprep.subr.msk.mxu0 %vm788_vm12, %v3888_v15  ;;  %v3940_v25 = vand.u32 4294901760, %v3242_v35  ;;  %v3941_v52 = vand.u32 4294901760, %v3192_v11 }
  0x78   :  { %v1153_v2 = vsub.f32 %v3131_v44, %v3937_v28  ;;  %1119 = vmatpush1.msra.mxu1 %v1118_v13  ;;  %v3320_v28 = vsub.f32 %v1953_v19, %v1953_v19  ;;  %v1148_v13 = vand.u32 4294901760, %v1147_v17  ;;  %2012 = vmatpush1.msk.msra.mxu0 %vm787_vm14, %v3888_v15 }
  0x79   :  { %1125 = vmatprep.subr.mxu1 %v1124_v42  ;;  %v983_v20 = vsub.f32 %v3242_v35, %v3940_v25  ;;  %v1171_v19 = vsub.f32 %v3192_v11, %v3941_v52  ;;  %v3942_v42 = vand.u32 4294901760, %v3210_v22  ;;  %2013 = vmatprep.subr.msk.mxu0 %vm786_vm0, %v3888_v15  ;;  %v1160_v25 = vand.u32 4294901760, %v1159_v53 }
  0x7a   :  { %1131 = vmatpush1.msra.mxu1 %v1130_v63  ;;  %v1154_v46 = vand.u32 4294901760, %v1153_v2  ;;  %v3943_v63 = vand.u32 4294901760, %v3219_v12  ;;  %2014 = vmatpush1.msk.msra.mxu0 %vm3892_vm1, %v3888_v15  ;;  %v1166_v2 = vand.u32 4294901760, %v1165_v24  ;;  %vm3952_vm1 = vcmp.eq.s32.totalorder %v2659_v60, %v2642_v58 }
  0x7b   :  { %v1177_v17 = vsub.f32 %v3210_v22, %v3942_v42  ;;  %1137 = vmatprep.subr.mxu1 %v1136_v29  ;;  %v3944_v29 = vand.u32 4294901760, %v3259_v27  ;;  %2015 = vmatprep.subr.msk.mxu0 %vm3891_vm4, %v3888_v15  ;;  %v984_v53 = vand.u32 4294901760, %v983_v20  ;;  %vm3951_vm4 = vcmp.eq.s32.totalorder %v2640_v57, %v2652_v45 }
  0x7c   :  { %v1183_v52 = vsub.f32 %v3219_v12, %v3943_v63  ;;  %1143 = vmatpush1.msra.mxu1 %v1142_v26  ;;  %v1172_v26 = vand.u32 4294901760, %v1171_v19  ;;  %v3945_v63 = vand.u32 4294901760, %v3273_v48  ;;  %2016 = vmatpush1.msk.msra.mxu0 %vm3890_vm10, %v3888_v15  ;;  %v3947_v19 = vand.u32 4294901760, %v3310_v4 }
  0x7d   :  { %v1189_v42 = vsub.f32 %v3259_v27, %v3944_v29  ;;  %1149 = vmatprep.subr.mxu1 %v1148_v13  ;;  %v1178_v24 = vand.u32 4294901760, %v1177_v17  ;;  %v3946_v13 = vand.u32 4294901760, %v3300_v3  ;;  %979 = vmatprep.mubr.f32.mxu0 %v3932_v10  ;;  %v3948_v15 = vand.u32 4294901760, %v3320_v28 }
  0x7e   :  { %v1195_v6 = vsub.f32 %v3273_v48, %v3945_v63  ;;  %1155 = vmatpush1.msra.mxu1 %v1154_v46  ;;  %v1184_v20 = vand.u32 4294901760, %v1183_v52  ;;  %v1207_v43 = vsub.f32 %v3310_v4, %v3947_v19  ;;  %v880_v63 = vld [vmem:[#allocation4 + $0x8] sm:$0xff]  ;;  %1279 = vmatprep.subr.mxu0 %v2710_v9  ;;  %v881_v19 = vld [vmem:[#allocation4 + $0x10] sm:$0xff]  ;;  %vm3950_vm10 = vcmp.eq.s32.totalorder %v2640_v57, %v2642_v58 }
  0x7f   :  { %v1201_v29 = vsub.f32 %v3300_v3, %v3946_v13  ;;  %1161 = vmatprep.subr.mxu1 %v1160_v25  ;;  %v1190_v46 = vand.u32 4294901760, %v1189_v42  ;;  %v1213_v17 = vsub.f32 %v3320_v28, %v3948_v15  ;;  %985 = vmatmul.mubr.f32.vlgmr.msra.gmra.mxu0 %v984_v53  ;;  %v3384_v52 = vand.u32 4294901760, %v880_v63  ;;  %v882_v53 = vld [vmem:[#allocation4 + $0x18] sm:$0xff] }
  0x80   :  { %1167 = vmatpush1.msra.mxu1 %v1166_v2  ;;  %v1196_v13 = vand.u32 4294901760, %v1195_v6  ;;  %1282 = vmatpush1.msra.mxu0 %v2729_v18  ;;  %v1208_v2 = vand.u32 4294901760, %v1207_v43  ;;  %v3394_v15 = vand.u32 4294901760, %v881_v19 }
  0x81   :  { %1173 = vmatprep.subr.mxu1 %v1172_v26  ;;  %v1202_v25 = vand.u32 4294901760, %v1201_v29  ;;  %1285 = vmatprep.subr.mxu0 %v2743_v34  ;;  %v1214_v42 = vand.u32 4294901760, %v1213_v17  ;;  %v3391_v6 = vsub.f32 %v880_v63, %v3384_v52  ;;  %v3949_v26 = vmov 1.0  }
  0x82   :  { %1179 = vmatpush1.msra.mxu1 %v1178_v24  ;;  %1288 = vmatpush1.msra.mxu0 %v2763_v37  ;;  %v3408_v24 = vsub.f32 %v881_v19, %v3394_v15  ;;  %v3420_v29 = vand.u32 4294901760, %v882_v53 }
  0x83   :  { %1185 = vmatprep.subr.mxu1 %v1184_v20  ;;  %1291 = vmatprep.subr.mxu0 %v2779_v41  ;;  %v993_v43 = vand.u32 4294901760, %v3391_v6 }
  0x84   :  { %1191 = vmatpush1.msra.mxu1 %v1190_v46  ;;  %1294 = vmatpush1.msra.mxu0 %v2807_v54  ;;  %v3894_v63 = vand.u32 4294901760, %v3408_v24  ;;  %v3447_v46 = vsub.f32 %v882_v53, %v3420_v29  ;;  %v3963_v53 = vld [vmem:[#allocation13_spill] sm:$0xff] }
  0x85   :  { %1197 = vmatprep.subr.mxu1 %v1196_v13  ;;  %1297 = vmatprep.subr.mxu0 %v2809_v55  ;;  %v994_v20 = vsub.f32 %v3391_v6, %v993_v43 }
  0x86   :  { %1203 = vmatpush1.msra.mxu1 %v1202_v25  ;;  %1300 = vmatpush1.msra.mxu0 %v2835_v38  ;;  %v1005_v13 = vsub.f32 %v3408_v24, %v3894_v63  ;;  %v3893_v25 = vand.u32 4294901760, %v3447_v46  ;;  %v3974_v63 = vand.u32 4294901760, %v2743_v34  ;;  %v3977_v34 = vand.u32 4294901760, %v2807_v54 }
  0x87   :  { %1209 = vmatprep.subr.mxu1 %v1208_v2  ;;  %1248 = vmatprep.mubr.f32.mxu1 %v3932_v10  ;;  %v995_v17 = vand.u32 4294901760, %v994_v20  ;;  %v3965_v20 = vld [vmem:[#allocation8_spill] sm:$0xff]  ;;  %v3983_v54 = vand.u32 4294901760, %v2837_v47 }
  0x88   :  { %1215 = vmatpush1.msra.mxu1 %v1214_v42  ;;  %1303 = vmatprep.subr.mxu0 %v2837_v47  ;;  %v1006_v2 = vand.u32 4294901760, %v1005_v13  ;;  %v3961_v42 = vld [vmem:[#allocation12_spill] sm:$0xff]  ;;  %v1016_v19 = vsub.f32 %v3447_v46, %v3893_v25  ;;  %v3968_v13 = vld [vmem:[#allocation9_spill] sm:$0xff]  ;;  %v3973_v25 = vand.u32 4294901760, %v2729_v18  ;;  %v3976_v18 = vand.u32 4294901760, %v2779_v41 }
  0x89   :  { %1250 = vmatmul.mubr.f32.vlgmr.msra.gmra.mxu1 %v3184_v21  ;;  %1306 = vmatpush1.msra.mxu0 %v2839_v56  ;;  %v3981_v41 = vand.u32 4294901760, %v2835_v38  ;;  %v3987_v38 = vand.u32 4294901760, %v2865_v39  ;;  %v3989_v47 = vand.u32 4294901760, %v2876_v62 }
  0x8a   :  { %2017 = vmatprep.subr.msk.mxu1 %vm3950_vm10, %v3949_v26  ;;  %1309 = vmatprep.subr.mxu0 %v2865_v39  ;;  %vm3953_vm10 = vcmp.eq.s32.totalorder %v2659_v60, %v2652_v45  ;;  %v3994_v39 = vand.u32 4294901760, %v2971_v31 }
  0x8b   :  { %2018 = vmatpush1.msk.msra.mxu1 %vm3951_vm4, %v3949_v26  ;;  %1312 = vmatpush1.msra.mxu0 %v2876_v62  ;;  %vm3955_vm4 = vcmp.eq.s32.totalorder %v2691_v30, %v2642_v58  ;;  %v3998_v62 = vand.u32 4294901760, %v2990_v51 }
  0x8c   :  { %2019 = vmatprep.subr.msk.mxu1 %vm3952_vm1, %v3949_v26  ;;  %1315 = vmatprep.subr.mxu0 %v2905_v40  ;;  %vm3954_vm1 = vcmp.eq.s32.totalorder %v2676_v61, %v2652_v45 }
  0x8d   :  { %2020 = vmatpush1.msk.msra.mxu1 %vm3953_vm10, %v3949_v26  ;;  %1318 = vmatpush1.msra.mxu0 %v2934_v50  ;;  %vm3956_vm10 = vcmp.eq.s32.totalorder %v2691_v30, %v2652_v45 }
  0x8e   :  { %2021 = vmatprep.subr.msk.mxu1 %vm810_vm13, %v3949_v26  ;;  %1321 = vmatprep.subr.mxu0 %v2971_v31  ;;  %v4003_v31 = vand.u32 4294901760, %v3050_v23 }
  0x8f   :  { %2022 = vmatpush1.msk.msra.mxu1 %vm3954_vm1, %v3949_v26  ;;  %1324 = vmatpush1.msra.mxu0 %v2988_v59  ;;  %vm3957_vm1 = vcmp.eq.s32.totalorder %v2704_v0, %v2642_v58 }
  0x90   :  { %2023 = vmatprep.subr.msk.mxu1 %vm3955_vm4, %v3949_v26  ;;  %1327 = vmatprep.subr.mxu0 %v2990_v51  ;;  %vm3958_vm4 = vcmp.eq.s32.totalorder %v2704_v0, %v2652_v45  ;;  %v4007_v51 = vand.u32 4294901760, %v3097_v16 }
  0x91   :  { %2024 = vmatpush1.msk.msra.mxu1 %vm3956_vm10, %v3949_v26  ;;  %1330 = vmatpush1.msra.mxu0 %v3024_v49  ;;  %vm3959_vm10 = vcmp.eq.s32.totalorder %v2723_v14, %v2642_v58 }
  0x92   :  { %2025 = vmatprep.subr.msk.mxu1 %vm3957_vm1, %v3949_v26  ;;  %1333 = vmatprep.subr.mxu0 %v3050_v23  ;;  %vm3960_vm1 = vcmp.eq.s32.totalorder %v2723_v14, %v2652_v45  ;;  %v4020_v23 = vand.u32 4294901760, %v3259_v27 }
  0x93   :  { %2026 = vmatpush1.msk.msra.mxu1 %vm3958_vm4, %v3949_v26  ;;  %990 = vmatprep.mubr.f32.mxu0 %v3932_v10  ;;  %vm3962_vm4 = vcmp.eq.s32.totalorder %v3961_v42, %v2642_v58 }
  0x94   :  { %1336 = vmatpush1.msra.mxu0 %v3052_v36  ;;  %2027 = vmatprep.subr.msk.mxu1 %vm3959_vm10, %v3949_v26  ;;  %vm3964_vm10 = vcmp.eq.s32.totalorder %v3963_v53, %v2642_v58 }
  0x95   :  { %996 = vmatmul.mubr.f32.gmra.mxu0 %v995_v17  ;;  %1339 = vmatprep.subr.mxu0 %v3097_v16  ;;  %v1017_v17 = vand.u32 4294901760, %v1016_v19  ;;  %v3971_v19 = vand.u32 4294901760, %v2710_v9  ;;  %v3975_v9 = vand.u32 4294901760, %v2763_v37  ;;  %v3979_v37 = vand.u32 4294901760, %v2809_v55 }
  0x96   :  { %2028 = vmatpush1.msk.msra.mxu1 %vm3960_vm1, %v3949_v26  ;;  %1342 = vmatpush1.msra.mxu0 %v3131_v44  ;;  %vm3966_vm1 = vcmp.eq.s32.totalorder %v3965_v20, %v2642_v58  ;;  %v3984_v55 = vand.u32 4294901760, %v3242_v35  ;;  %v4016_v16 = vand.u32 4294901760, %v3210_v22 }
  0x97   :  { %2029 = vmatprep.subr.msk.mxu1 %vm3962_vm4, %v3949_v26  ;;  %1345 = vmatprep.subr.mxu0 %v3163_v33  ;;  %vm3967_vm4 = vcmp.eq.s32.totalorder %v3965_v20, %v2652_v45 }
  0x98   :  { %2030 = vmatpush1.msk.msra.mxu1 %vm801_vm2, %v3949_v26  ;;  %1001 = vmatprep.mubr.f32.mxu0 %v3932_v10 }
  0x99   :  { %1348 = vmatpush1.msra.mxu0 %v3165_v32  ;;  %2031 = vmatprep.subr.msk.mxu1 %vm3964_vm10, %v3949_v26  ;;  %vm3969_vm10 = vcmp.eq.s32.totalorder %v3968_v13, %v2642_v58 }
  0x9a   :  { %1007 = vmatmul.mubr.f32.gmra.mxu0 %v1006_v2  ;;  %1351 = vmatprep.subr.mxu0 %v3192_v11 }
  0x9b   :  { %2032 = vmatpush1.msk.msra.mxu1 %vm799_vm3, %v3949_v26  ;;  %1255 = vmatprep.mubr.f32.mxu1 %v3932_v10 }
  0x9c   :  { %1354 = vmatpush1.msra.mxu0 %v3210_v22  ;;  %2033 = vmatprep.subr.msk.mxu1 %vm3966_vm1, %v3949_v26  ;;  %vm3978_vm1 = vcmp.eq.s32.totalorder %v2393_v8, %v2652_v45  ;;  %v4022_v22 = vand.u32 4294901760, %v3273_v48 }
  0x9d   :  { %1257 = vmatmul.mubr.f32.gmra.mxu1 %v3384_v52  ;;  %1357 = vmatprep.subr.mxu0 %v3219_v12 }
  0x9e   :  { %2034 = vmatpush1.msk.msra.mxu1 %vm3967_vm4, %v3949_v26  ;;  %1012 = vmatprep.mubr.f32.mxu0 %v3932_v10  ;;  %vm3980_vm4 = vcmp.eq.s32.totalorder %v2372_v1, %v2642_v58 }
  0x9f   :  { %1360 = vmatpush1.msra.mxu0 %v3259_v27  ;;  %2035 = vmatprep.subr.msk.mxu1 %vm3969_vm10, %v3949_v26  ;;  %vm3982_vm10 = vcmp.eq.s32.totalorder %v2372_v1, %v2652_v45 }
  0xa0   :  { %1018 = vmatmul.mubr.f32.gmra.mxu0 %v1017_v17  ;;  %1363 = vmatprep.subr.mxu0 %v3273_v48 }
  0xa1   :  { %2036 = vmatpush1.msk.msra.mxu1 %vm795_vm9, %v3949_v26  ;;  %1262 = vmatprep.mubr.f32.mxu1 %v3932_v10 }
  0xa2   :  { %1366 = vmatpush1.msra.mxu0 %v3300_v3  ;;  %2037 = vmatprep.subr.msk.mxu1 %vm794_vm6, %v3949_v26 }
  0xa3   :  { %1264 = vmatmul.mubr.f32.gmra.mxu1 %v3394_v15  ;;  %1369 = vmatprep.subr.mxu0 %v3310_v4 }
  0xa4   :  { %2038 = vmatpush1.msk.msra.mxu1 %vm793_vm7, %v3949_v26  ;;  %1372 = vmatpush1.msra.mxu0 %v3320_v28 }
  0xa5   :  { %1405 = vmatprep.mubr.f32.mxu0 %v3932_v10  ;;  %2039 = vmatprep.subr.msk.mxu1 %vm792_vm8, %v3949_v26 }
  0xa6   :  { %1408 = vmatmul.mubr.f32.vlgmr.msra.gmra.mxu0 %v3242_v35  ;;  %2040 = vmatpush1.msk.msra.mxu1 %vm791_vm5, %v3949_v26 }
  0xa7   :  { %1574 = vmatprep.subr.mxu0 %v3971_v19  ;;  %1269 = vmatprep.mubr.f32.mxu1 %v3932_v10 }
  0xa8   :  { %2041 = vmatprep.subr.msk.mxu1 %vm790_vm11, %v3949_v26  ;;  %1578 = vmatpush1.msra.mxu0 %v3973_v25 }
  0xa9   :  { %1271 = vmatmul.mubr.f32.gmra.mxu1 %v3420_v29  ;;  %1582 = vmatprep.subr.mxu0 %v3974_v63  ;;  %v3985_v63 = vand.u32 4294901760, %v2839_v56  ;;  %v3991_v56 = vand.u32 4294901760, %v2905_v40  ;;  %v4012_v40 = vand.u32 4294901760, %v3163_v33  ;;  %v4024_v33 = vand.u32 4294901760, %v3310_v4 }
  0xaa   :  { %2042 = vmatpush1.msk.msra.mxu1 %vm789_vm15, %v3949_v26  ;;  %1413 = vmatprep.mubr.f32.mxu0 %v3932_v10 }
  0xab   :  { %2043 = vmatprep.subr.msk.mxu1 %vm788_vm12, %v3949_v26  ;;  %1586 = vmatpush1.msra.mxu0 %v3975_v9 }
  0xac   :  { %1416 = vmatmul.mubr.f32.gmra.mxu0 %v3391_v6  ;;  %2044 = vmatpush1.msk.msra.mxu1 %vm787_vm14, %v3949_v26 }
  0xad   :  { %1590 = vmatprep.subr.mxu0 %v3976_v18  ;;  %2045 = vmatprep.subr.msk.mxu1 %vm786_vm0, %v3949_v26 }
  0xae   :  { %1594 = vmatpush1.msra.mxu0 %v3977_v34  ;;  %2046 = vmatpush1.msk.msra.mxu1 %vm3978_vm1, %v3949_v26  ;;  %vm3986_vm1 = vcmp.eq.s32.totalorder %v2640_v57, %v2642_v58 }
  0xaf   :  { %1598 = vmatprep.subr.mxu0 %v3979_v37  ;;  %1421 = vmatprep.mubr.f32.mxu0 %v3932_v10 }
  0xb0   :  { %2047 = vmatprep.subr.msk.mxu1 %vm3980_vm4, %v3949_v26  ;;  %1602 = vmatpush1.msra.mxu0 %v3981_v41  ;;  %vm3988_vm4 = vcmp.eq.s32.totalorder %v2640_v57, %v2652_v45  ;;  %v3993_v57 = vand.u32 4294901760, %v2934_v50  ;;  %v4015_v50 = vand.u32 4294901760, %v3192_v11 }
  0xb1   :  { %1424 = vmatmul.mubr.f32.gmra.mxu0 %v3408_v24  ;;  %2048 = vmatpush1.msk.msra.mxu1 %vm3982_vm10, %v3949_v26  ;;  %vm3990_vm10 = vcmp.eq.s32.totalorder %v2659_v60, %v2642_v58 }
  0xb2   :  { %1534 = vmatprep.mubr.f32.mxu1 %v3932_v10  ;;  %1606 = vmatprep.subr.mxu0 %v3983_v54 }
  0xb3   :  { %1538 = vmatmul.mubr.f32.vlgmr.msra.gmra.mxu1 %v3984_v55  ;;  %1610 = vmatpush1.msra.mxu0 %v3985_v63 }
  0xb4   :  { %2049 = vmatprep.subr.msk.mxu1 %vm3986_vm1, %v3949_v26  ;;  %1614 = vmatprep.subr.mxu0 %v3987_v38  ;;  %vm3992_vm1 = vcmp.eq.s32.totalorder %v2659_v60, %v2652_v45  ;;  %v3996_v60 = vand.u32 4294901760, %v2988_v59  ;;  %v4001_v59 = vand.u32 4294901760, %v3024_v49  ;;  %v4018_v49 = vand.u32 4294901760, %v3219_v12 }
  0xb5   :  { %2050 = vmatpush1.msk.msra.mxu1 %vm3988_vm4, %v3949_v26  ;;  %1429 = vmatprep.mubr.f32.mxu0 %v3932_v10  ;;  %vm3995_vm4 = vcmp.eq.s32.totalorder %v2676_v61, %v2652_v45  ;;  %v4000_v61 = vand.u32 4294901760, %v3408_v24 }
  0xb6   :  { %1618 = vmatpush1.msra.mxu0 %v3989_v47  ;;  %2051 = vmatprep.subr.msk.mxu1 %vm3990_vm10, %v3949_v26  ;;  %vm3997_vm10 = vcmp.eq.s32.totalorder %v2691_v30, %v2642_v58 }
  0xb7   :  { %1432 = vmatmul.mubr.f32.gmra.mxu0 %v3447_v46  ;;  %1543 = vmatprep.mubr.f32.mxu1 %v3932_v10 }
  0xb8   :  { %1622 = vmatprep.subr.mxu0 %v3991_v56  ;;  %2052 = vmatpush1.msk.msra.mxu1 %vm3992_vm1, %v3949_v26  ;;  %vm4002_vm1 = vcmp.eq.s32.totalorder %v2704_v0, %v2642_v58 }
  0xb9   :  { %1547 = vmatmul.mubr.f32.gmra.mxu1 %v993_v43  ;;  %1626 = vmatpush1.msra.mxu0 %v3993_v57 }
  0xba   :  { %2053 = vmatprep.subr.msk.mxu1 %vm810_vm13, %v3949_v26  ;;  %1630 = vmatprep.subr.mxu0 %v3994_v39  ;;  %vm3999_vm13 = vcmp.eq.s32.totalorder %v2691_v30, %v2652_v45  ;;  %v4005_v30 = vand.u32 4294901760, %v3052_v36  ;;  %v4010_v36 = vand.u32 4294901760, %v3131_v44  ;;  %v4023_v44 = vand.u32 4294901760, %v3300_v3 }
  0xbb   :  { %2054 = vmatpush1.msk.msra.mxu1 %vm3995_vm4, %v3949_v26  ;;  %1634 = vmatpush1.msra.mxu0 %v3996_v60  ;;  %vm4004_vm4 = vcmp.eq.s32.totalorder %v2704_v0, %v2652_v45  ;;  %v4009_v0 = vand.u32 4294901760, %v3447_v46 }
  0xbc   :  { %2055 = vmatprep.subr.msk.mxu1 %vm3997_vm10, %v3949_v26  ;;  %1552 = vmatprep.mubr.f32.mxu1 %v3932_v10  ;;  %vm4006_vm10 = vcmp.eq.s32.totalorder %v2723_v14, %v2642_v58 }
  0xbd   :  { %1638 = vmatprep.subr.mxu0 %v3998_v62  ;;  %2056 = vmatpush1.msk.msra.mxu1 %vm3999_vm13, %v3949_v26  ;;  %vm4008_vm13 = vcmp.eq.s32.totalorder %v2723_v14, %v2652_v45  ;;  %v4013_v14 = vand.u32 4294901760, %v3165_v32  ;;  %v4025_v32 = vand.u32 4294901760, %v3320_v28 }
  0xbe   :  { %1556 = vmatmul.mubr.f32.gmra.mxu1 %v4000_v61  ;;  %1642 = vmatpush1.msra.mxu0 %v4001_v59 }
  0xbf   :  { %2057 = vmatprep.subr.msk.mxu1 %vm4002_vm1, %v3949_v26  ;;  %1646 = vmatprep.subr.mxu0 %v4003_v31  ;;  %vm4011_vm1 = vcmp.eq.s32.totalorder %v3961_v42, %v2642_v58 }
  0xc0   :  { %2058 = vmatpush1.msk.msra.mxu1 %vm4004_vm4, %v3949_v26  ;;  %1650 = vmatpush1.msra.mxu0 %v4005_v30  ;;  %vm4014_vm4 = vcmp.eq.s32.totalorder %v3963_v53, %v2642_v58 }
  0xc1   :  { %2059 = vmatprep.subr.msk.mxu1 %vm4006_vm10, %v3949_v26  ;;  %1561 = vmatprep.mubr.f32.mxu1 %v3932_v10  ;;  %vm4019_vm10 = vcmp.eq.s32.totalorder %v3965_v20, %v2652_v45 }
  0xc2   :  { %1654 = vmatprep.subr.mxu0 %v4007_v51  ;;  %2060 = vmatpush1.msk.msra.mxu1 %vm4008_vm13, %v3949_v26 }
  0xc3   :  { %1565 = vmatmul.mubr.f32.gmra.mxu1 %v4009_v0  ;;  %1658 = vmatpush1.msra.mxu0 %v4010_v36 }
  0xc4   :  { %2061 = vmatprep.subr.msk.mxu1 %vm4011_vm1, %v3949_v26  ;;  %1662 = vmatprep.subr.mxu0 %v4012_v40 }
  0xc5   :  { %2062 = vmatpush1.msk.msra.mxu1 %vm801_vm2, %v3949_v26  ;;  %1666 = vmatpush1.msra.mxu0 %v4013_v14  ;;  %vm4017_vm2 = vcmp.eq.s32.totalorder %v3965_v20, %v2642_v58 }
  0xc6   :  { %2063 = vmatprep.subr.msk.mxu1 %vm4014_vm4, %v3949_v26  ;;  %1670 = vmatprep.subr.mxu0 %v4015_v50 }
  0xc7   :  { %2064 = vmatpush1.msk.msra.mxu1 %vm799_vm3, %v3949_v26  ;;  %1674 = vmatpush1.msra.mxu0 %v4016_v16  ;;  %vm4021_vm3 = vcmp.eq.s32.totalorder %v3968_v13, %v2642_v58 }
  0xc8   :  { %2065 = vmatprep.subr.msk.mxu1 %vm4017_vm2, %v3949_v26  ;;  %1678 = vmatprep.subr.mxu0 %v4018_v49 }
  0xc9   :  { %2066 = vmatpush1.msk.msra.mxu1 %vm4019_vm10, %v3949_v26  ;;  %1682 = vmatpush1.msra.mxu0 %v4020_v23 }
  0xca   :  { %2067 = vmatprep.subr.msk.mxu1 %vm4021_vm3, %v3949_v26  ;;  %1686 = vmatprep.subr.mxu0 %v4022_v22 }
  0xcb   :  { %2068 = vmatpush1.msk.msra.mxu1 %vm795_vm9, %v3949_v26  ;;  %1690 = vmatpush1.msra.mxu0 %v4023_v44  ;;  %vm4026_vm9 = vcmp.eq.s32.totalorder %v2393_v8, %v2652_v45 }
  0xcc   :  { %2069 = vmatprep.subr.msk.mxu1 %vm794_vm6, %v3949_v26  ;;  %1694 = vmatprep.subr.mxu0 %v4024_v33 }
  0xcd   :  { %2070 = vmatpush1.msk.msra.mxu1 %vm793_vm7, %v3949_v26  ;;  %1698 = vmatpush1.msra.mxu0 %v4025_v32 }
  0xce   :  { %1731 = vmatprep.mubr.f32.mxu0 %v3932_v10  ;;  %2071 = vmatprep.subr.msk.mxu1 %vm792_vm8, %v3949_v26 }
  0xcf   :  { %1733 = vmatmul.mubr.f32.vlgmr.msra.gmra.mxu0 %v3184_v21  ;;  %2072 = vmatpush1.msk.msra.mxu1 %vm791_vm5, %v3949_v26 }
  0xd0   :  { %2073 = vmatprep.subr.msk.mxu1 %vm790_vm11, %v3949_v26  ;;  %1738 = vmatprep.mubr.f32.mxu0 %v3932_v10  ;;  %vm4027_vm11 = vcmp.eq.s32.totalorder %v2372_v1, %v2642_v58 }
  0xd1   :  { %2074 = vmatpush1.msk.msra.mxu1 %vm789_vm15, %v3949_v26  ;;  %1856 = vmatprep.mubr.f32.mxu1 %v3932_v10  ;;  %vm4028_vm15 = vcmp.eq.s32.totalorder %v2372_v1, %v2652_v45 }
  0xd2   :  { %2075 = vmatprep.subr.msk.mxu1 %vm788_vm12, %v3949_v26 }
  0xd3   :  { %1740 = vmatmul.mubr.f32.gmra.mxu0 %v3384_v52  ;;  %2076 = vmatpush1.msk.msra.mxu1 %vm787_vm14, %v3949_v26 }
  0xd4   :  { %2077 = vmatprep.subr.msk.mxu1 %vm786_vm0, %v3949_v26  ;;  %1745 = vmatprep.mubr.f32.mxu0 %v3932_v10  ;;  %vm1911_vm0 = vcmask 1040384  }
  0xd5   :  { %2078 = vmatpush1.msk.msra.mxu1 %vm4026_vm9, %v3949_v26 }
  0xd6   :  { %2079 = vmatprep.subr.msk.mxu1 %vm4027_vm11, %v3949_v26 }
  0xd7   :  { %1747 = vmatmul.mubr.f32.gmra.mxu0 %v3394_v15  ;;  %2080 = vmatpush1.msk.msra.mxu1 %vm4028_vm15, %v3949_v26 }
  0xd8   :  { %1858 = vmatmul.mubr.f32.vlgmr.msra.gmra.mxu1 %v3184_v21  ;;  %1752 = vmatprep.mubr.f32.mxu0 %v3932_v10 }
  0xd9   :  { %1863 = vmatprep.mubr.f32.mxu1 %v3932_v10 }
  0xdb   :  { %1754 = vmatmul.mubr.f32.gmra.mxu0 %v3420_v29 }
  0xdc   :  { %1865 = vmatmul.mubr.f32.gmra.mxu1 %v3384_v52 }
  0xdd   :  { %1870 = vmatprep.mubr.f32.mxu1 %v3932_v10 }
  0xe0   :  { %1872 = vmatmul.mubr.f32.gmra.mxu1 %v3394_v15 }
  0xe1   :  { %1877 = vmatprep.mubr.f32.mxu1 %v3932_v10 }
  0xe4   :  { %1879 = vmatmul.mubr.f32.gmra.mxu1 %v3420_v29 }
  0xf3   :  { %v2171_v1 = vpop.f32.mrf.mxu0 }
  0xf5   :  { %v187_v3 = vpop.f32.mrf.mxu0 }
  0xfc   :  { %v2193_v7 = vpop.f32.mrf.mxu1 }
  0xfd   :  { %v335_v49 = vadd.f32 %v2193_v7, %v2171_v1 }
  0xfe   :  { %v328_v58 = vpop.f32.mrf.mxu1 }
  0xff   :  { %v329_v44 = vadd.f32 %v328_v58, %v187_v3 }
 0x100   :  { %v2174_v4 = vpop.f32.mrf.mxu0 }
 0x102   :  { %v207_v5 = vpop.f32.mrf.mxu0 }
 0x105   :  { %v2215_v8 = vpop.f32.mrf.mxu0 }
 0x106   :  { %v442_v33 = vadd.f32 %v2215_v8, %v335_v49 }
 0x107   :  { %v434_v45 = vpop.f32.mrf.mxu0 }
 0x108   :  { %v2196_v21 = vpop.f32.mrf.mxu1 }
 0x109   :  { %v347_v50 = vadd.f32 %v2196_v21, %v2174_v4 }
 0x10a   :  { %v340_v12 = vpop.f32.mrf.mxu1 }
 0x10b   :  { %v2218_v11 = vpop.f32.mrf.mxu0  ;;  %v341_v23 = vadd.f32 %v340_v12, %v207_v5 }
 0x10d   :  { %v448_v27 = vpop.f32.mrf.mxu0 }
 0x111   :  { %v2237_v35 = vpop.f32.mrf.mxu1 }
 0x113   :  { %v536_v28 = vpop.f32.mrf.mxu1 }
 0x116   :  { %v2240_v10 = vpop.f32.mrf.mxu1 }
 0x118   :  { %v552_v15 = vpop.f32.mrf.mxu1 }
 0x11a   :  { %v3808_v48 = vpop.f32.mrf.mxu0 }
 0x11b   :  { %4029 = vst [vmem:[#allocation12_spill] sm:$0xff] %v3808_v48 }
 0x11c   :  { %v3810_v52 = vpop.f32.mrf.mxu0 }
 0x11d   :  { %4030 = vst [vmem:[#allocation13_spill] sm:$0xff] %v3810_v52 }
 0x11f   :  { %v3812_v6 = vpop.f32.mrf.mxu0 }
 0x120   :  { %4031 = vst [vmem:[#allocation8_spill] sm:$0xff] %v3812_v6  ;;  %v435_v6 = vadd.f32 %v434_v45, %v329_v44 }
 0x121   :  { %v3816_v26 = vpop.f32.mrf.mxu0 }
 0x122   :  { %4033 = vst [vmem:[#allocation10_spill] sm:$0xff] %v3816_v26  ;;  %v545_v26 = vadd.f32 %v2237_v35, %v442_v33  ;;  %v537_v21 = vadd.f32 %v536_v28, %v435_v6 }
 0x124   :  { %v4039_v45 = vld [vmem:[#allocation13_spill] sm:$0xff] }
 0x125   :  { %v3814_v43 = vpop.f32.mrf.mxu1 }
 0x126   :  { %4032 = vst [vmem:[#allocation9_spill] sm:$0xff] %v3814_v43  ;;  %v449_v43 = vadd.f32 %v448_v27, %v341_v23 }
 0x127   :  { %v3818_v29 = vpop.f32.mrf.mxu1 }
 0x128   :  { %4034 = vst [vmem:[#allocation11_spill] sm:$0xff] %v3818_v29  ;;  %v553_v3 = vadd.f32 %v552_v15, %v449_v43 }
 0x129   :  { %v3820_v25 = vpop.f32.mrf.mxu1 }
 0x12a   :  { %4035 = vst [vmem:[#allocation14_spill] sm:$0xff] %v3820_v25 }
 0x12b   :  { %v3822_v53 = vpop.f32.mrf.mxu1 }
 0x12c   :  { %4036 = vst [vmem:[#allocation15_spill] sm:$0xff] %v3822_v53  ;;  %v456_v53 = vadd.f32 %v2218_v11, %v347_v50  ;;  %v656_v11 = vadd.f32 %v4039_v45, %v537_v21 }
 0x12e   :  { %v561_v1 = vadd.f32 %v2240_v10, %v456_v53  ;;  %v4040_v10 = vld [vmem:[#allocation10_spill] sm:$0xff] }
 0x12f   :  { %v668_v6 = vadd.f32 %v4040_v10, %v553_v3 }
 0x13f   :  { %v986_v24 = vpop.f32.mrf.mxu0 }
 0x141   :  { %v988_v46 = vpop.f32.mrf.mxu0 }
 0x149   :  { %v1251_v13 = vpop.f32.mrf.mxu1 }
 0x14a   :  { %v1252_v29 = vadd.f32 %v1251_v13, %v986_v24 }
 0x14b   :  { %v1253_v19 = vpop.f32.mrf.mxu1 }
 0x14c   :  { %v1254_v7 = vadd.f32 %v1253_v19, %v988_v46 }
 0x155   :  { %v997_v42 = vpop.f32.mrf.mxu0 }
 0x157   :  { %v999_v20 = vpop.f32.mrf.mxu0 }
 0x15a   :  { %v1008_v2 = vpop.f32.mrf.mxu0 }
 0x15c   :  { %v1010_v9 = vpop.f32.mrf.mxu0 }
 0x15d   :  { %v1258_v17 = vpop.f32.mrf.mxu1 }
 0x15e   :  { %v1259_v32 = vadd.f32 %v1258_v17, %v997_v42  ;;  %v4038_v42 = vld [vmem:[#allocation12_spill] sm:$0xff] }
 0x15f   :  { %v1260_v18 = vpop.f32.mrf.mxu1  ;;  %v662_v17 = vadd.f32 %v4038_v42, %v545_v26 }
 0x160   :  { %v1019_v34 = vpop.f32.mrf.mxu0  ;;  %v1261_v52 = vadd.f32 %v1260_v18, %v999_v20 }
 0x162   :  { %v3824_v41 = vpop.f32.mrf.mxu0 }
 0x163   :  { %v1265_v37 = vpop.f32.mrf.mxu1  ;;  %4037 = vst [vmem:[#allocation16_spill] sm:$0xff] %v3824_v41 }
 0x164   :  { %v1266_v58 = vadd.f32 %v1265_v37, %v1008_v2  ;;  %v4041_v2 = vld [vmem:[#allocation9_spill] sm:$0xff] }
 0x165   :  { %v1267_v54 = vpop.f32.mrf.mxu1  ;;  %v759_v19 = vadd.f32 %v4041_v2, %v662_v17 }
 0x166   :  { %v1409_v55 = vpop.f32.mrf.mxu0  ;;  %v1268_v20 = vadd.f32 %v1267_v54, %v1010_v9 }
 0x167   :  { %v1410_v5 = vadd.f32 %v1409_v55, %v1252_v29 }
 0x168   :  { %v1411_v38 = vpop.f32.mrf.mxu0 }
 0x169   :  { %v1272_v63 = vpop.f32.mrf.mxu1  ;;  %v1412_v24 = vadd.f32 %v1411_v38, %v1254_v7 }
 0x16a   :  { %v1273_v29 = vadd.f32 %v1272_v63, %v1019_v34  ;;  %v4042_v37 = vld [vmem:[#allocation16_spill] sm:$0xff]  ;;  %v4043_v34 = vld [vmem:[#allocation11_spill] sm:$0xff] }
 0x16b   :  { %v1274_v47 = vpop.f32.mrf.mxu1  ;;  %v753_v63 = vadd.f32 %v4043_v34, %v656_v11 }
 0x16c   :  { %v1417_v56 = vpop.f32.mrf.mxu0  ;;  %v1275_v55 = vadd.f32 %v1274_v47, %v4042_v37  ;;  %v4045_v47 = vld [vmem:[#allocation8_spill] sm:$0xff] }
 0x16d   :  { %v1418_v48 = vadd.f32 %v1417_v56, %v1259_v32 }
 0x16e   :  { %v1419_v39 = vpop.f32.mrf.mxu0 }
 0x16f   :  { %v1420_v8 = vadd.f32 %v1419_v39, %v1261_v52 }
 0x171   :  { %v1425_v62 = vpop.f32.mrf.mxu0 }
 0x172   :  { %v1426_v18 = vadd.f32 %v1425_v62, %v1266_v58 }
 0x173   :  { %v1539_v57 = vpop.f32.mrf.mxu1  ;;  %v1427_v59 = vpop.f32.mrf.mxu0 }
 0x174   :  { %v1540_v13 = vadd.f32 %v1539_v57, %v1410_v5  ;;  %v1428_v52 = vadd.f32 %v1427_v59, %v1268_v20 }
 0x175   :  { %v1541_v60 = vpop.f32.mrf.mxu1 }
 0x176   :  { %v1542_v46 = vadd.f32 %v1541_v60, %v1412_v24  ;;  %v4044_v60 = vld [vmem:[#allocation15_spill] sm:$0xff] }
 0x177   :  { %v1433_v30 = vpop.f32.mrf.mxu0 }
 0x178   :  { %v1434_v39 = vadd.f32 %v1433_v30, %v1273_v29 }
 0x179   :  { %v1548_v61 = vpop.f32.mrf.mxu1  ;;  %v1435_v0 = vpop.f32.mrf.mxu0 }
 0x17a   :  { %v1549_v49 = vadd.f32 %v1548_v61, %v1418_v48  ;;  %v1436_v59 = vadd.f32 %v1435_v0, %v1275_v55 }
 0x17b   :  { %v1550_v31 = vpop.f32.mrf.mxu1 }
 0x17c   :  { %v1551_v56 = vadd.f32 %v1550_v31, %v1420_v8 }
 0x17e   :  { %v1557_v51 = vpop.f32.mrf.mxu1 }
 0x17f   :  { %v1558_v48 = vadd.f32 %v1557_v51, %v1426_v18 }
 0x180   :  { %v1559_v36 = vpop.f32.mrf.mxu1 }
 0x181   :  { %v1560_v62 = vadd.f32 %v1559_v36, %v1428_v52 }
 0x183   :  { %v1566_v16 = vpop.f32.mrf.mxu1 }
 0x184   :  { %v1567_v50 = vadd.f32 %v1566_v16, %v1434_v39 }
 0x185   :  { %v1568_v41 = vpop.f32.mrf.mxu1 }
 0x186   :  { %v1569_v33 = vadd.f32 %v1568_v41, %v1436_v59 }
 0x18f   :  { %v1734_v40 = vpop.f32.mrf.mxu0 }
 0x190   :  { %v1735_v15 = vadd.f32 %v1734_v40, %v1540_v13  ;;  %v765_v40 = vadd.f32 %v4044_v60, %v668_v6 }
 0x191   :  { %v1736_v14 = vpop.f32.mrf.mxu0 }
 0x192   :  { %v1737_v38 = vadd.f32 %v1736_v14, %v1542_v46  ;;  %v674_v14 = vadd.f32 %v4045_v47, %v561_v1 }
 0x193   :  { %v1741_v22 = vpop.f32.mrf.mxu0 }
 0x194   :  { %v1742_v28 = vadd.f32 %v1741_v22, %v1549_v49 }
 0x195   :  { %v1743_v25 = vpop.f32.mrf.mxu0 }
 0x196   :  { %v1744_v53 = vadd.f32 %v1743_v25, %v1551_v56 }
 0x197   :  { %v1748_v4 = vpop.f32.mrf.mxu0 }
 0x198   :  { %v1859_v12 = vpop.f32.mrf.mxu1  ;;  %v1749_v61 = vadd.f32 %v1748_v4, %v1558_v48 }
 0x199   :  { %v1750_v27 = vpop.f32.mrf.mxu0  ;;  %v1860_v57 = vadd.f32 %v1859_v12, %v1735_v15  ;;  %v4046_v12 = vld [vmem:[#allocation14_spill] sm:$0xff] }
 0x19a   :  { %v1861_v35 = vpop.f32.mrf.mxu1  ;;  %v1751_v23 = vadd.f32 %v1750_v27, %v1560_v62  ;;  %v771_v3 = vadd.f32 %v4046_v12, %v674_v14 }
 0x19b   :  { %v1755_v9 = vpop.f32.mrf.mxu0  ;;  %v1862_v51 = vadd.f32 %v1861_v35, %v1737_v38  ;;  %v1885_v32 = vmul.f32 %v1860_v57, %v753_v63 }
 0x19c   :  { %v1866_v43 = vpop.f32.mrf.mxu1  ;;  %v1756_v36 = vadd.f32 %v1755_v9, %v1567_v50 }
 0x19d   :  { %v1867_v26 = vadd.f32 %v1866_v43, %v1742_v28  ;;  %v1757_v21 = vpop.f32.mrf.mxu0  ;;  %v1898_v58 = vmul.f32 %v1862_v51, %v753_v63 }
 0x19e   :  { %v1868_v54 = vpop.f32.mrf.mxu1  ;;  %v1758_v49 = vadd.f32 %v1757_v21, %v1569_v33 }
 0x19f   :  { %v1869_v31 = vadd.f32 %v1868_v54, %v1744_v53  ;;  %v1886_v22 = vmul.f32 %v1867_v26, %v759_v19 }
 0x1a0   :  { %v1873_v25 = vpop.f32.mrf.mxu1 }
 0x1a1   :  { %v1874_v44 = vadd.f32 %v1873_v25, %v1749_v61  ;;  %v1899_v4 = vmul.f32 %v1869_v31, %v759_v19  ;;  %v1889_v8 = vadd.f32 %v1886_v22, %v1885_v32 }
 0x1a2   :  { %v1875_v30 = vpop.f32.mrf.mxu1 }
 0x1a3   :  { %v1887_v7 = vmul.f32 %v1874_v44, %v765_v40  ;;  %v1876_v5 = vadd.f32 %v1875_v30, %v1751_v23  ;;  %v1902_v45 = vadd.f32 %v1899_v4, %v1898_v58 }
 0x1a4   :  { %v1880_v0 = vpop.f32.mrf.mxu1 }
 0x1a5   :  { %v1900_v16 = vmul.f32 %v1876_v5, %v765_v40  ;;  %v1881_v42 = vadd.f32 %v1880_v0, %v1756_v36  ;;  %v1890_v11 = vadd.f32 %v1889_v8, %v1887_v7 }
 0x1a6   :  { %v1882_v17 = vpop.f32.mrf.mxu1 }
 0x1a7   :  { %v1888_v1 = vmul.f32 %v1881_v42, %v771_v3  ;;  %v1883_v41 = vadd.f32 %v1882_v17, %v1758_v49  ;;  %v1903_v24 = vadd.f32 %v1902_v45, %v1900_v16 }
 0x1a9   :  { %v1891_v13 = vadd.f32 %v1890_v11, %v1888_v1  ;;  %v1901_v27 = vmul.f32 %v1883_v41, %v771_v3 }
 0x1ab   :  { %v1892_v35 = vrot.slane %v1891_v13, 4  ;;  %v1904_v20 = vadd.f32 %v1903_v24, %v1901_v27 }
 0x1ad   :  { %v1893_v18 = vadd.f32 %v1892_v35, %v1891_v13  ;;  %v1905_v56 = vrot.slane %v1904_v20, 4 }
 0x1af   :  { %v1894_v28 = vrot.slane %v1893_v18, 2  ;;  %v1906_v10 = vadd.f32 %v1905_v56, %v1904_v20 }
 0x1b1   :  { %v1895_v6 = vadd.f32 %v1894_v28, %v1893_v18  ;;  %v1907_v29 = vrot.slane %v1906_v10, 2 }
 0x1b3   :  { %v1896_v46 = vrot.slane %v1895_v6, 1  ;;  %v1908_v15 = vadd.f32 %v1907_v29, %v1906_v10 }
 0x1b5   :  { %v1909_v43 = vrot.slane %v1908_v15, 1  ;;  %v1897_v52 = vadd.f32 %v1896_v46, %v1895_v6 }
 0x1b7   :  { %v1910_v48 = vadd.f32 %v1909_v43, %v1908_v15 }
 0x1b9   :  { %v1912_v53 = vsel %vm1911_vm0, %v1897_v52, %v1910_v48 }
 0x1ba   :  { %1913 = vst [vmem:[%s3842_s4] sm:$0x3] %v1912_v53 }
 0x1bb   :  { %1918 = vsyncpa [#allocation3], 1 }
 0x1bc   :  { %1919 = vsyncpa [#allocation5], 1 }

</bundles_post_ra>
